<compile_context>
chip_gen: v7x
topology: tpu7x:2x2x1
jax: 0.10.0
libtpu: 0.0.40
codegen_flags: <defaults>
</compile_context>

<pallas_src>
import numpy as np
import jax
import jax.numpy as jnp
from jax.experimental import pallas as pl
from jax.experimental.pallas import tpu as pltpu

LANE = 128   # lane (last-dim) alignment
ROW = 16     # sublane alignment for dst-row tiles (bf16-friendly)


def _rup(n, m):
    return ((n + m - 1) // m) * m


def _cdiv(n, m):
    return (n + m - 1) // m


def _pad2(x, rows, cols):
    return jnp.pad(x, ((0, rows - x.shape[0]), (0, cols - x.shape[1])))


def _bdot(a, b):
    # bf16 MXU inputs, f32 accumulation.
    return jnp.dot(a.astype(jnp.bfloat16), b.astype(jnp.bfloat16),
                   preferred_element_type=jnp.float32)


def _mlp(x, w1, b1, w2, b2):
    # OneLayerNN: relu(x @ W1 + b1) @ W2 + b2      (bias / relu in f32, v5e-safe)
    h = jnp.maximum(_bdot(x, w1) + b1, 0.0)
    return _bdot(h, w2) + b2


def _vmem_cap_bytes():
    try:
        cap = getattr(pltpu.get_tpu_info(), "vmem_capacity_bytes", None)
        if cap:
            return int(cap)
    except Exception:
        pass
    return 64 * 2 ** 20          # conservative fallback = v7x physical VMEM


# ----------------------- fused per-block kernel (hot path) ----------------------- #

def _make_block_kernel(tnd, has_fc):
    """One NodeFlow block: input_layer_e + phi + segment-sum + self_h + NodeUpdate
    (+ final fc when has_fc) fully fused.  Grid = (dst_tile, edge_tile)."""

    def kernel(koff_ref, cnt_ref,                        # scalar prefetch (SMEM)
               dst_ref, ef_ref, hsrc_ref, hsel_ref, norm_ref,
               ew1, eb1, ew2, eb2,                       # input_layer_e
               pw1a, pw1b, pb1, pw2, pb2,                # phi (split W1)
               nw1a, nw1b, nb1, nw2, nb2,                # NodeUpdate layer (split W1)
               *rest):
        if has_fc:
            fcw, fcb, o_ref, acc_ref = rest              # scratch acc only for last layer
        else:
            (o_ref,) = rest
            acc_ref = o_ref                              # accumulate in the resident output

        d = pl.program_id(0)                             # dst-row tile ("parallel")
        k = pl.program_id(1)                             # edge tile ("arbitrary" reduction)

        @pl.when(k == 0)
        def _init():
            acc_ref[...] = jnp.zeros_like(acc_ref)

        # Edges are pre-sorted by destination; only edge tiles
        # koff[d] .. koff[d]+cnt[d]-1 can touch this dst tile — skip the rest.
        @pl.when(k < cnt_ref[d])
        def _accumulate():
            # e = input_layer_e(edge_features)      — no (E,H) HBM intermediate
            e = _mlp(ef_ref[...], ew1[...], eb1[...], ew2[...], eb2[...])
            # m = phi(cat(e, h_src))                — W1 pre-split: concat = 2 matmuls
            pre = _bdot(e, pw1a[...]) + _bdot(hsrc_ref[...], pw1b[...]) + pb1[...]
            m = _bdot(jnp.maximum(pre, 0.0), pw2[...]) + pb2[...]      # (te, Hp) f32
            # fn.sum(msg='m', out='h'): one-hot scatter restricted to this dst
            # tile's rows; (tnd,1) iota broadcast against the (1,te) dst ids
            # (padded edges carry dst = -1 and never match).
            rows = jax.lax.broadcasted_iota(jnp.int32, (tnd, 1), 0) + d * tnd
            onehot = (rows == dst_ref[...]).astype(jnp.bfloat16)       # (tnd, te)
            acc_ref[...] += jnp.dot(onehot, m.astype(jnp.bfloat16),
                                    preferred_element_type=jnp.float32)

        @pl.when(k == pl.num_programs(1) - 1)
        def _finalize():
            # self_h = phi(cat(zeros, h[layer_nid])) — zeros block drops the W1a term
            pre_s = _bdot(hsel_ref[...], pw1b[...]) + pb1[...]
            self_h = _bdot(jnp.maximum(pre_s, 0.0), pw2[...]) + pb2[...]
            # NodeUpdate (test=False): h = (h_agg - self_h) * subg_norm ; OneLayerNN(cat)
            u = (acc_ref[...] - self_h) * norm_ref[...]
            pre_n = _bdot(u, nw1a[...]) + _bdot(self_h, nw1b[...]) + nb1[...]
            h_out = _bdot(jnp.maximum(pre_n, 0.0), nw2[...]) + nb2[...]
            if has_fc:
                o_ref[...] = _bdot(h_out, fcw[...]) + fcb[...]         # fused final fc
            else:
                o_ref[...] = h_out

    return kernel


def fused_block(ef, src, dst, h, layer_nid, subg_norm, ilp, phip, nodep,
                fcp=None, *, tile_e=1024, tile_nd=256):
    """Run one NodeFlow block.  `h` is the bf16 (lane-padded) feature table of
    the source layer; returns f32 activations of the destination layer."""
    E = int(ef.shape[0])
    Nd = int(layer_nid.shape[0])
    Ein = ilp[0].shape[0]                   # padded edge-feature width
    Hin = phip[1].shape[0]                  # padded source-feature width (== h.shape[1])
    Hp = phip[3].shape[1]                   # padded hidden width
    has_fc = fcp is not None
    out_w = fcp[0].shape[1] if has_fc else Hp

    # ---- edge tiling (prefer 256-wide K for v6e/v7x MXUs) ----
    align = 256 if min(tile_e, E) >= 256 else LANE
    te = _rup(min(tile_e, _rup(E, align)), align)
    Ep = _rup(E, te)

    # ---- dst-row tiling (the "parallel" axis; shards across TCs on v7x) ----
    tnd = _rup(min(tile_nd, _rup(Nd, ROW)), ROW)
    n_dt = _cdiv(Nd, tnd)
    Ndp = n_dt * tnd

    # ---- host-side NodeFlow bookkeeping (CSR-ish): sort edges by destination
    #      and find, per dst tile, the contiguous edge-tile range touching it.
    dst_np = np.asarray(jax.device_get(dst)).astype(np.int32)
    perm_np = np.argsort(dst_np, kind="stable").astype(np.int32)
    dst_sorted = dst_np[perm_np]
    bounds = np.arange(n_dt + 1, dtype=np.int64) * tnd
    lo = np.searchsorted(dst_sorted, bounds[:-1], side="left")
    hi = np.searchsorted(dst_sorted, bounds[1:], side="left")
    nonempty = hi > lo
    koff_np = np.where(nonempty, lo // te, 0).astype(np.int32)
    cnt_np = np.where(nonempty, np.maximum(hi - 1, 0) // te - lo // te + 1,
                      0).astype(np.int32)
    max_kt = max(int(cnt_np.max()), 1)

    # ---- device operands: streamed / gathered activations in bf16 ----
    perm = jnp.asarray(perm_np)
    ef_p = _pad2(jnp.asarray(ef)[perm], Ep, Ein).astype(jnp.bfloat16)
    hsrc_p = _pad2(h[jnp.asarray(src)[perm]], Ep, Hin).astype(jnp.bfloat16)
    hsel_p = _pad2(h[layer_nid], Ndp, Hin).astype(jnp.bfloat16)
    norm_p = _pad2(subg_norm, Ndp, 1).astype(jnp.float32)
    dst_p = jnp.asarray(np.pad(dst_sorted, (0, Ep - E),
                               constant_values=-1).reshape(1, Ep), dtype=jnp.int32)
    koff = jnp.asarray(koff_np)
    cnt = jnp.asarray(cnt_np)

    weights = (*ilp, *phip, *nodep) + (tuple(fcp) if has_fc else ())

    # index maps receive the scalar-prefetch refs positionally after grid idxs.
    def _edge_tile(d, k, koff_ref, cnt_ref):
        # clamp so tail iterations repeat the last relevant tile (repeated block
        # index => DMA elided) instead of streaming irrelevant edge tiles.
        return koff_ref[d] + jnp.minimum(k, jnp.maximum(cnt_ref[d] - 1, 0))

    edge_map = lambda d, k, ko, cn: (_edge_tile(d, k, ko, cn), 0)
    dstid_map = lambda d, k, ko, cn: (0, _edge_tile(d, k, ko, cn))
    dtile_map = lambda d, k, ko, cn: (d, 0)
    fixed_map = lambda d, k, ko, cn: (0, 0)

    # TODO(synk): single-buffer the grid-invariant weight blocks
    # (pipeline_mode=pl.Buffered(1)) and move the h[src]/h[layer_nid] row
    # gathers in-kernel (manual make_async_copy gather) — VMEM/HBM savings only.
    in_specs = [
        pl.BlockSpec((1, te), dstid_map),        # sorted destination ids
        pl.BlockSpec((te, Ein), edge_map),       # edge-feature tile (bf16)
        pl.BlockSpec((te, Hin), edge_map),       # gathered h[src] tile (bf16)
        pl.BlockSpec((tnd, Hin), dtile_map),     # h[layer_nid] rows of this dst tile
        pl.BlockSpec((tnd, 1), dtile_map),       # subg_norm rows of this dst tile
    ] + [pl.BlockSpec(w.shape, fixed_map) for w in weights]

    # ---- VMEM budget: double-buffered stream + per-dst-tile blocks + weights ----
    stream = 2 * (te * Ein * 2 + te * Hin * 2 + te * 4)
    per_d = 2 * (tnd * Hin * 2 + tnd * 4 + tnd * out_w * 4)
    w_bytes = 2 * sum(int(w.size) * w.dtype.itemsize for w in weights)
    scratch = tnd * Hp * 4 if has_fc else 0
    temps = 3 * te * Hp * 4 + tnd * te * 2 + 4 * tnd * Hp * 4
    est = int(1.5 * (stream + per_d + w_bytes + scratch + temps)) + (4 << 20)
    cap_hi = int(_vmem_cap_bytes() * 0.75)       # ≈48 MiB on v7x, ≈96 MiB on v5e/v6e
    vmem_limit = max(min(est, cap_hi), min(32 * 2 ** 20, cap_hi))

    out = pl.pallas_call(
        _make_block_kernel(tnd, has_fc),
        out_shape=jax.ShapeDtypeStruct((Ndp, out_w), jnp.float32),
        grid_spec=pltpu.PrefetchScalarGridSpec(
            num_scalar_prefetch=2,
            grid=(n_dt, max_kt),
            in_specs=in_specs,
            out_specs=pl.BlockSpec((tnd, out_w), dtile_map),
            scratch_shapes=([pltpu.VMEM((tnd, Hp), jnp.float32)] if has_fc else []),
        ),
        compiler_params=pltpu.CompilerParams(
            dimension_semantics=("parallel", "arbitrary"),
            vmem_limit_bytes=vmem_limit),
    )(koff, cnt, dst_p, ef_p, hsrc_p, hsel_p, norm_p, *weights)
    return out[:Nd]


# ------------------------- parameters (deterministic) ---------------------------- #

def init_linear_params(key, fan_in, fan_out):
    k1, k2 = jax.random.split(key)
    bound = 1.0 / (fan_in ** 0.5)
    w = jax.random.uniform(k1, (fan_in, fan_out), jnp.float32, -bound, bound)
    b = jax.random.uniform(k2, (1, fan_out), jnp.float32, -bound, bound)
    return w, b


def init_one_layer_nn(key, in_dim, out_dim):
    k1, k2 = jax.random.split(key)
    w1, b1 = init_linear_params(k1, in_dim, out_dim)
    w2, b2 = init_linear_params(k2, out_dim, out_dim)
    return dict(w1=w1, b1=b1, w2=w2, b2=b2)


def init_params(key, num_layers, in_dim, edge_in_dim, num_hidden, num_classes):
    keys = jax.random.split(key, 3 + 2 * num_layers)
    params = {}
    params['input_layer_e'] = init_one_layer_nn(keys[0], edge_in_dim, num_hidden)
    params['node_layers'] = [
        init_one_layer_nn(keys[1 + i], 2 * num_hidden, num_hidden)
        for i in range(num_layers)]
    phi_in = [in_dim + num_hidden] + [2 * num_hidden] * (num_layers - 1)
    params['phi'] = [
        init_one_layer_nn(keys[1 + num_layers + i], phi_in[i], num_hidden)
        for i in range(num_layers)]
    # final fc: xavier_normal_(gain=0.1) weight, default uniform bias
    kfw, kfb = jax.random.split(keys[1 + 2 * num_layers])
    std = 0.1 * (2.0 / (num_hidden + num_classes)) ** 0.5
    fcw = std * jax.random.normal(kfw, (num_hidden, num_classes), jnp.float32)
    bound = 1.0 / (num_hidden ** 0.5)
    fcb = jax.random.uniform(kfb, (1, num_classes), jnp.float32, -bound, bound)
    params['fc'] = dict(w=fcw, b=fcb)
    return params


def prepare_params(params, num_layers, in_dim, edge_in_dim, H, C):
    """Zero-pad feature dims to multiples of 128, split concat-W1s, cast weights bf16."""
    Hp, Cp = _rup(H, LANE), _rup(C, LANE)
    Ein, Din = _rup(edge_in_dim, LANE), _rup(in_dim, LANE)
    bf = jnp.bfloat16

    def pw(w, rp, cp):
        return _pad2(w, rp, cp).astype(bf)

    def pb(b, cp):
        return _pad2(b, 1, cp)

    il = params['input_layer_e']
    pp = {'input_layer_e': (pw(il['w1'], Ein, Hp), pb(il['b1'], Hp),
                            pw(il['w2'], Hp, Hp), pb(il['b2'], Hp)),
          'phi': [], 'node': []}
    h_in = Din
    for i in range(num_layers):
        phi = params['phi'][i]
        pp['phi'].append((pw(phi['w1'][:H], Hp, Hp),        # e / zeros part
                          pw(phi['w1'][H:], h_in, Hp),      # h part
                          pb(phi['b1'], Hp),
                          pw(phi['w2'], Hp, Hp), pb(phi['b2'], Hp)))
        nd = params['node_layers'][i]
        pp['node'].append((pw(nd['w1'][:H], Hp, Hp),         # (h_agg-self_h)*norm part
                           pw(nd['w1'][H:], Hp, Hp),         # self_h part
                           pb(nd['b1'], Hp),
                           pw(nd['w2'], Hp, Hp), pb(nd['b2'], Hp)))
        h_in = Hp
    pp['fc'] = (pw(params['fc']['w'], Hp, Cp), pb(params['fc']['b'], Cp))
    return pp


# --------------------------------- forward pass ---------------------------------- #

def minibatch_edgeprop_forward(params, nf, num_layers, in_dim, edge_in_dim,
                               num_hidden, num_classes, *, tile_e=1024, tile_nd=256):
    # TODO(synk): DGL NodeFlow bookkeeping (layer_parent_nid / map_from_parent_nid)
    # is precomputed outside and supplied as the 'layer_nid' index arrays.
    pp = prepare_params(params, num_layers, in_dim, edge_in_dim,
                        num_hidden, num_classes)
    n0 = nf['node_features'].shape[0]
    # bf16 feature table: halves the gather + kernel-stream HBM traffic; the MXU
    # consumed bf16 anyway so numerics match the previous behaviour.
    h = _pad2(nf['node_features'], n0, _rup(in_dim, LANE)).astype(jnp.bfloat16)
    out = None
    for i, blk in enumerate(nf['blocks']):
        last = (i == num_layers - 1)
        out = fused_block(blk['edge_features'], blk['src'], blk['dst'], h,
                          blk['layer_nid'], blk['subg_norm'],
                          pp['input_layer_e'], pp['phi'][i], pp['node'][i],
                          fcp=(pp['fc'] if last else None),
                          tile_e=tile_e, tile_nd=tile_nd)
        if not last:
            h = out.astype(jnp.bfloat16)
    return out[:, :num_classes]


# ------------------------------ pure-JAX reference -------------------------------- #

def _ref_mlp(x, p):
    h = jnp.maximum(x @ p['w1'] + p['b1'], 0.0)
    return h @ p['w2'] + p['b2']


def ref_forward(params, nf, num_hidden):
    H = num_hidden
    h = nf['node_features']
    for i, blk in enumerate(nf['blocks']):
        phi = params['phi'][i]
        nodep = params['node_layers'][i]
        e = _ref_mlp(blk['edge_features'], params['input_layer_e'])
        h_sel = h[blk['layer_nid']]
        self_in = jnp.concatenate(
            [jnp.zeros((h_sel.shape[0], H), jnp.float32), h_sel], axis=1)
        self_h = _ref_mlp(self_in, phi)
        m = _ref_mlp(jnp.concatenate([e, h[blk['src']]], axis=1), phi)
        h_agg = jax.ops.segment_sum(m, blk['dst'], num_segments=blk['n_dst'])
        u = (h_agg - self_h) * blk['subg_norm']
        h = _ref_mlp(jnp.concatenate([u, self_h], axis=1), nodep)
    return h @ params['fc']['w'] + params['fc']['b']


# -------------------------------------- main --------------------------------------- #

if __name__ == "__main__":
    num_layers = 2
    in_dim, edge_in_dim, num_hidden, num_classes = 16, 8, 32, 5
    layer_sizes = [40, 24, 12]       # NodeFlow layer sizes (small)
    edge_counts = [300, 160]         # edges per block -> multiple 128-edge tiles

    key = jax.random.PRNGKey(0)
    kp, kd = jax.random.split(key)
    params = init_params(kp, num_layers, in_dim, edge_in_dim, num_hidden,
                         num_classes)

    dkeys = jax.random.split(kd, 1 + 5 * num_layers)
    node_features = jax.random.normal(dkeys[0], (layer_sizes[0], in_dim),
                                      jnp.float32)
    blocks = []
    for i in range(num_layers):
        ks = dkeys[1 + 5 * i: 1 + 5 * (i + 1)]
        n_src, n_dst, n_edges = layer_sizes[i], layer_sizes[i + 1], edge_counts[i]
        blocks.append(dict(
            edge_features=jax.random.normal(ks[0], (n_edges, edge_in_dim),
                                            jnp.float32),
            src=jax.random.randint(ks[1], (n_edges,), 0, n_src, jnp.int32),
            dst=jax.random.randint(ks[2], (n_edges,), 0, n_dst, jnp.int32),
            layer_nid=jax.random.randint(ks[3], (n_dst,), 0, n_src, jnp.int32),
            subg_norm=jax.random.uniform(ks[4], (n_dst, 1), jnp.float32, 0.1, 1.0),
            n_dst=n_dst))
    nf = dict(node_features=node_features, blocks=blocks)

    # small tiles so the demo exercises several edge tiles per dst tile and >1
    # dst tile on the "parallel" axis (scalar-prefetched koff/cnt ranges).
    out = minibatch_edgeprop_forward(params, nf, num_layers, in_dim, edge_in_dim,
                                     num_hidden, num_classes,
                                     tile_e=128, tile_nd=16)
    out = jax.block_until_ready(out)

    ref = ref_forward(params, nf, num_hidden)   # full-f32 reference
    assert out.shape == (layer_sizes[-1], num_classes)
    # bf16 MXU inputs => tolerance loosened vs. the f32 reference
    assert jnp.allclose(out, ref, atol=7.5e-2, rtol=7.5e-2), "mismatch vs reference"

    print("KERNEL_OK")
</pallas_src>

<mosaic_0001>
module attributes {stable_mosaic.version = 11 : i64} {
  func.func @kernel(%arg0: i32, %arg1: i32, %arg2: memref<2xi32, #tpu.memory_space<smem>>, %arg3: memref<2xi32, #tpu.memory_space<smem>>, %arg4: memref<1x128xi32, #tpu.memory_space<vmem>>, %arg5: memref<128x128xbf16, #tpu.memory_space<vmem>>, %arg6: memref<128x128xbf16, #tpu.memory_space<vmem>>, %arg7: memref<16x128xbf16, #tpu.memory_space<vmem>>, %arg8: memref<16x1xf32, #tpu.memory_space<vmem>>, %arg9: memref<128x128xbf16, #tpu.memory_space<vmem>>, %arg10: memref<1x128xf32, #tpu.memory_space<vmem>>, %arg11: memref<128x128xbf16, #tpu.memory_space<vmem>>, %arg12: memref<1x128xf32, #tpu.memory_space<vmem>>, %arg13: memref<128x128xbf16, #tpu.memory_space<vmem>>, %arg14: memref<128x128xbf16, #tpu.memory_space<vmem>>, %arg15: memref<1x128xf32, #tpu.memory_space<vmem>>, %arg16: memref<128x128xbf16, #tpu.memory_space<vmem>>, %arg17: memref<1x128xf32, #tpu.memory_space<vmem>>, %arg18: memref<128x128xbf16, #tpu.memory_space<vmem>>, %arg19: memref<128x128xbf16, #tpu.memory_space<vmem>>, %arg20: memref<1x128xf32, #tpu.memory_space<vmem>>, %arg21: memref<128x128xbf16, #tpu.memory_space<vmem>>, %arg22: memref<1x128xf32, #tpu.memory_space<vmem>>, %arg23: memref<16x128xf32, #tpu.memory_space<vmem>>) attributes {dimension_semantics = [#tpu.dimension_semantics<parallel>, #tpu.dimension_semantics<arbitrary>], iteration_bounds = array<i64: 2, 2>, scalar_prefetch = 2 : i64, scratch_operands = 0 : i64, tpu.core_type = #tpu.core_type<tc>, window_params = [{transform_indices = @transform_0, window_bounds = array<i64: 1, 128>}, {transform_indices = @transform_1, window_bounds = array<i64: 128, 128>}, {transform_indices = @transform_2, window_bounds = array<i64: 128, 128>}, {transform_indices = @transform_3, window_bounds = array<i64: 16, 128>}, {transform_indices = @transform_4, window_bounds = array<i64: 16, 1>}, {pipeline_mode = #tpu.pipeline_mode<synchronous>, transform_indices = @transform_5, window_bounds = array<i64: 128, 128>}, {pipeline_mode = #tpu.pipeline_mode<synchronous>, transform_indices = @transform_6, window_bounds = array<i64: 1, 128>}, {pipeline_mode = #tpu.pipeline_mode<synchronous>, transform_indices = @transform_7, window_bounds = array<i64: 128, 128>}, {pipeline_mode = #tpu.pipeline_mode<synchronous>, transform_indices = @transform_8, window_bounds = array<i64: 1, 128>}, {pipeline_mode = #tpu.pipeline_mode<synchronous>, transform_indices = @transform_9, window_bounds = array<i64: 128, 128>}, {pipeline_mode = #tpu.pipeline_mode<synchronous>, transform_indices = @transform_10, window_bounds = array<i64: 128, 128>}, {pipeline_mode = #tpu.pipeline_mode<synchronous>, transform_indices = @transform_11, window_bounds = array<i64: 1, 128>}, {pipeline_mode = #tpu.pipeline_mode<synchronous>, transform_indices = @transform_12, window_bounds = array<i64: 128, 128>}, {pipeline_mode = #tpu.pipeline_mode<synchronous>, transform_indices = @transform_13, window_bounds = array<i64: 1, 128>}, {pipeline_mode = #tpu.pipeline_mode<synchronous>, transform_indices = @transform_14, window_bounds = array<i64: 128, 128>}, {pipeline_mode = #tpu.pipeline_mode<synchronous>, transform_indices = @transform_15, window_bounds = array<i64: 128, 128>}, {pipeline_mode = #tpu.pipeline_mode<synchronous>, transform_indices = @transform_16, window_bounds = array<i64: 1, 128>}, {pipeline_mode = #tpu.pipeline_mode<synchronous>, transform_indices = @transform_17, window_bounds = array<i64: 128, 128>}, {pipeline_mode = #tpu.pipeline_mode<synchronous>, transform_indices = @transform_18, window_bounds = array<i64: 1, 128>}, {transform_indices = @transform_19, window_bounds = array<i64: 16, 128>}]} {
    %c0_i32 = arith.constant 0 : i32
    %0 = arith.cmpi eq, %arg1, %c0_i32 : i32
    %1 = arith.extui %0 : i1 to i32
    %c0_i32_0 = arith.constant 0 : i32
    %2 = arith.cmpi ne, %1, %c0_i32_0 : i32
    scf.if %2 {
      %cst = arith.constant 0.000000e+00 : f32
      %11 = vector.broadcast %cst : f32 to vector<16x128xf32>
      %c0 = arith.constant 0 : index
      %c0_3 = arith.constant 0 : index
      %12 = vector.load %arg23[%c0, %c0_3] : memref<16x128xf32, #tpu.memory_space<vmem>>, vector<16x128xf32>
      tpu.vector_store %arg23[%c0, %c0_3], %11 {strides = array<i32>} : memref<16x128xf32, #tpu.memory_space<vmem>>, vector<16x128xf32>,
    } else {
    }
    %3 = arith.index_cast %arg0 : i32 to index
    %4 = memref.load %arg3[%3] : memref<2xi32, #tpu.memory_space<smem>>
    %5 = arith.cmpi slt, %arg1, %4 : i32
    %6 = arith.extui %5 : i1 to i32
    %c0_i32_1 = arith.constant 0 : i32
    %7 = arith.cmpi ne, %6, %c0_i32_1 : i32
    scf.if %7 {
      %c0 = arith.constant 0 : index
      %c0_3 = arith.constant 0 : index
      %11 = vector.load %arg5[%c0, %c0_3] : memref<128x128xbf16, #tpu.memory_space<vmem>>, vector<128x128xbf16>
      %c0_4 = arith.constant 0 : index
      %c0_5 = arith.constant 0 : index
      %12 = vector.load %arg9[%c0_4, %c0_5] : memref<128x128xbf16, #tpu.memory_space<vmem>>, vector<128x128xbf16>
      %c0_6 = arith.constant 0 : index
      %c0_7 = arith.constant 0 : index
      %13 = vector.load %arg10[%c0_6, %c0_7] : memref<1x128xf32, #tpu.memory_space<vmem>>, vector<1x128xf32>
      %c0_8 = arith.constant 0 : index
      %c0_9 = arith.constant 0 : index
      %14 = vector.load %arg11[%c0_8, %c0_9] : memref<128x128xbf16, #tpu.memory_space<vmem>>, vector<128x128xbf16>
      %c0_10 = arith.constant 0 : index
      %c0_11 = arith.constant 0 : index
      %15 = vector.load %arg12[%c0_10, %c0_11] : memref<1x128xf32, #tpu.memory_space<vmem>>, vector<1x128xf32>
      %cst = arith.constant dense<0.000000e+00> : vector<128x128xf32>
      %16 = tpu.matmul %11, %12, %cst {dimension_numbers = #tpu.dot_dimension_numbers<[1], [0], [0], [1], [0, 0, 1, 1], [], []>} : vector<128x128xbf16>, vector<128x128xbf16>, vector<128x128xf32> -> vector<128x128xf32>
      %17 = vector.broadcast %13 : vector<1x128xf32> to vector<128x128xf32>
      %18 = arith.addf %16, %17 : vector<128x128xf32>
      %cst_12 = arith.constant 0.000000e+00 : f32
      %19 = vector.broadcast %cst_12 : f32 to vector<128x128xf32>
      %20 = arith.maximumf %18, %19 : vector<128x128xf32>
      %21 = arith.truncf %20 : vector<128x128xf32> to vector<128x128xbf16>
      %cst_13 = arith.constant dense<0.000000e+00> : vector<128x128xf32>
      %22 = tpu.matmul %21, %14, %cst_13 {dimension_numbers = #tpu.dot_dimension_numbers<[1], [0], [0], [1], [0, 0, 1, 1], [], []>} : vector<128x128xbf16>, vector<128x128xbf16>, vector<128x128xf32> -> vector<128x128xf32>
      %23 = vector.broadcast %15 : vector<1x128xf32> to vector<128x128xf32>
      %24 = arith.addf %22, %23 : vector<128x128xf32>
      %c0_14 = arith.constant 0 : index
      %c0_15 = arith.constant 0 : index
      %25 = vector.load %arg13[%c0_14, %c0_15] : memref<128x128xbf16, #tpu.memory_space<vmem>>, vector<128x128xbf16>
      %26 = arith.truncf %24 : vector<128x128xf32> to vector<128x128xbf16>
      %cst_16 = arith.constant dense<0.000000e+00> : vector<128x128xf32>
      %27 = tpu.matmul %26, %25, %cst_16 {dimension_numbers = #tpu.dot_dimension_numbers<[1], [0], [0], [1], [0, 0, 1, 1], [], []>} : vector<128x128xbf16>, vector<128x128xbf16>, vector<128x128xf32> -> vector<128x128xf32>
      %c0_17 = arith.constant 0 : index
      %c0_18 = arith.constant 0 : index
      %28 = vector.load %arg6[%c0_17, %c0_18] : memref<128x128xbf16, #tpu.memory_space<vmem>>, vector<128x128xbf16>
      %c0_19 = arith.constant 0 : index
      %c0_20 = arith.constant 0 : index
      %29 = vector.load %arg14[%c0_19, %c0_20] : memref<128x128xbf16, #tpu.memory_space<vmem>>, vector<128x128xbf16>
      %cst_21 = arith.constant dense<0.000000e+00> : vector<128x128xf32>
      %30 = tpu.matmul %28, %29, %cst_21 {dimension_numbers = #tpu.dot_dimension_numbers<[1], [0], [0], [1], [0, 0, 1, 1], [], []>} : vector<128x128xbf16>, vector<128x128xbf16>, vector<128x128xf32> -> vector<128x128xf32>
      %31 = arith.addf %27, %30 : vector<128x128xf32>
      %c0_22 = arith.constant 0 : index
      %c0_23 = arith.constant 0 : index
      %32 = vector.load %arg15[%c0_22, %c0_23] : memref<1x128xf32, #tpu.memory_space<vmem>>, vector<1x128xf32>
      %33 = vector.broadcast %32 : vector<1x128xf32> to vector<128x128xf32>
      %34 = arith.addf %31, %33 : vector<128x128xf32>
      %cst_24 = arith.constant 0.000000e+00 : f32
      %35 = vector.broadcast %cst_24 : f32 to vector<128x128xf32>
      %36 = arith.maximumf %34, %35 : vector<128x128xf32>
      %c0_25 = arith.constant 0 : index
      %c0_26 = arith.constant 0 : index
      %37 = vector.load %arg16[%c0_25, %c0_26] : memref<128x128xbf16, #tpu.memory_space<vmem>>, vector<128x128xbf16>
      %38 = arith.truncf %36 : vector<128x128xf32> to vector<128x128xbf16>
      %cst_27 = arith.constant dense<0.000000e+00> : vector<128x128xf32>
      %39 = tpu.matmul %38, %37, %cst_27 {dimension_numbers = #tpu.dot_dimension_numbers<[1], [0], [0], [1], [0, 0, 1, 1], [], []>} : vector<128x128xbf16>, vector<128x128xbf16>, vector<128x128xf32> -> vector<128x128xf32>
      %c0_28 = arith.constant 0 : index
      %c0_29 = arith.constant 0 : index
      %40 = vector.load %arg17[%c0_28, %c0_29] : memref<1x128xf32, #tpu.memory_space<vmem>>, vector<1x128xf32>
      %41 = vector.broadcast %40 : vector<1x128xf32> to vector<128x128xf32>
      %42 = arith.addf %39, %41 : vector<128x128xf32>
      %43 = tpu.iota {dimensions = array<i32: 0>} : vector<16x1xi32>
      %c16_i32 = arith.constant 16 : i32
      %44 = arith.muli %arg0, %c16_i32 : i32
      %45 = vector.broadcast %44 : i32 to vector<16x1xi32>
      %46 = arith.addi %43, %45 : vector<16x1xi32>
      %c0_30 = arith.constant 0 : index
      %c0_31 = arith.constant 0 : index
      %47 = vector.load %arg4[%c0_30, %c0_31] : memref<1x128xi32, #tpu.memory_space<vmem>>, vector<1x128xi32>
      %48 = vector.broadcast %46 : vector<16x1xi32> to vector<16x128xi32>
      %49 = vector.broadcast %47 : vector<1x128xi32> to vector<16x128xi32>
      %50 = arith.cmpi eq, %48, %49 : vector<16x128xi32>
      %51 = arith.extui %50 : vector<16x128xi1> to vector<16x128xi32>
      %52 = arith.sitofp %51 : vector<16x128xi32> to vector<16x128xf32>
      %53 = arith.truncf %52 : vector<16x128xf32> to vector<16x128xbf16>
      %c0_32 = arith.constant 0 : index
      %c0_33 = arith.constant 0 : index
      %54 = vector.load %arg23[%c0_32, %c0_33] : memref<16x128xf32, #tpu.memory_space<vmem>>, vector<16x128xf32>
      %55 = arith.truncf %42 : vector<128x128xf32> to vector<128x128xbf16>
      %cst_34 = arith.constant dense<0.000000e+00> : vector<16x128xf32>
      %56 = tpu.matmul %53, %55, %cst_34 {dimension_numbers = #tpu.dot_dimension_numbers<[1], [0], [0], [1], [0, 0, 1, 1], [], []>} : vector<16x128xbf16>, vector<128x128xbf16>, vector<16x128xf32> -> vector<16x128xf32>
      %57 = arith.addf %54, %56 : vector<16x128xf32>
      %c0_35 = arith.constant 0 : index
      %c0_36 = arith.constant 0 : index
      %58 = vector.load %arg23[%c0_35, %c0_36] : memref<16x128xf32, #tpu.memory_space<vmem>>, vector<16x128xf32>
      tpu.vector_store %arg23[%c0_35, %c0_36], %57 {strides = array<i32>} : memref<16x128xf32, #tpu.memory_space<vmem>>, vector<16x128xf32>,
    } else {
    }
    %c1_i32 = arith.constant 1 : i32
    %8 = arith.cmpi eq, %arg1, %c1_i32 : i32
    %9 = arith.extui %8 : i1 to i32
    %c0_i32_2 = arith.constant 0 : i32
    %10 = arith.cmpi ne, %9, %c0_i32_2 : i32
    scf.if %10 {
      %c0 = arith.constant 0 : index
      %c0_3 = arith.constant 0 : index
      %11 = vector.load %arg7[%c0, %c0_3] : memref<16x128xbf16, #tpu.memory_space<vmem>>, vector<16x128xbf16>
      %c0_4 = arith.constant 0 : index
      %c0_5 = arith.constant 0 : index
      %12 = vector.load %arg14[%c0_4, %c0_5] : memref<128x128xbf16, #tpu.memory_space<vmem>>, vector<128x128xbf16>
      %cst = arith.constant dense<0.000000e+00> : vector<16x128xf32>
      %13 = tpu.matmul %11, %12, %cst {dimension_numbers = #tpu.dot_dimension_numbers<[1], [0], [0], [1], [0, 0, 1, 1], [], []>} : vector<16x128xbf16>, vector<128x128xbf16>, vector<16x128xf32> -> vector<16x128xf32>
      %c0_6 = arith.constant 0 : index
      %c0_7 = arith.constant 0 : index
      %14 = vector.load %arg15[%c0_6, %c0_7] : memref<1x128xf32, #tpu.memory_space<vmem>>, vector<1x128xf32>
      %15 = vector.broadcast %14 : vector<1x128xf32> to vector<16x128xf32>
      %16 = arith.addf %13, %15 : vector<16x128xf32>
      %cst_8 = arith.constant 0.000000e+00 : f32
      %17 = vector.broadcast %cst_8 : f32 to vector<16x128xf32>
      %18 = arith.maximumf %16, %17 : vector<16x128xf32>
      %c0_9 = arith.constant 0 : index
      %c0_10 = arith.constant 0 : index
      %19 = vector.load %arg16[%c0_9, %c0_10] : memref<128x128xbf16, #tpu.memory_space<vmem>>, vector<128x128xbf16>
      %20 = arith.truncf %18 : vector<16x128xf32> to vector<16x128xbf16>
      %cst_11 = arith.constant dense<0.000000e+00> : vector<16x128xf32>
      %21 = tpu.matmul %20, %19, %cst_11 {dimension_numbers = #tpu.dot_dimension_numbers<[1], [0], [0], [1], [0, 0, 1, 1], [], []>} : vector<16x128xbf16>, vector<128x128xbf16>, vector<16x128xf32> -> vector<16x128xf32>
      %c0_12 = arith.constant 0 : index
      %c0_13 = arith.constant 0 : index
      %22 = vector.load %arg17[%c0_12, %c0_13] : memref<1x128xf32, #tpu.memory_space<vmem>>, vector<1x128xf32>
      %23 = vector.broadcast %22 : vector<1x128xf32> to vector<16x128xf32>
      %24 = arith.addf %21, %23 : vector<16x128xf32>
      %c0_14 = arith.constant 0 : index
      %c0_15 = arith.constant 0 : index
      %25 = vector.load %arg23[%c0_14, %c0_15] : memref<16x128xf32, #tpu.memory_space<vmem>>, vector<16x128xf32>
      %26 = arith.subf %25, %24 : vector<16x128xf32>
      %c0_16 = arith.constant 0 : index
      %c0_17 = arith.constant 0 : index
      %27 = vector.load %arg8[%c0_16, %c0_17] : memref<16x1xf32, #tpu.memory_space<vmem>>, vector<16x1xf32>
      %28 = vector.broadcast %27 : vector<16x1xf32> to vector<16x128xf32>
      %29 = arith.mulf %26, %28 : vector<16x128xf32>
      %c0_18 = arith.constant 0 : index
      %c0_19 = arith.constant 0 : index
      %30 = vector.load %arg18[%c0_18, %c0_19] : memref<128x128xbf16, #tpu.memory_space<vmem>>, vector<128x128xbf16>
      %31 = arith.truncf %29 : vector<16x128xf32> to vector<16x128xbf16>
      %cst_20 = arith.constant dense<0.000000e+00> : vector<16x128xf32>
      %32 = tpu.matmul %31, %30, %cst_20 {dimension_numbers = #tpu.dot_dimension_numbers<[1], [0], [0], [1], [0, 0, 1, 1], [], []>} : vector<16x128xbf16>, vector<128x128xbf16>, vector<16x128xf32> -> vector<16x128xf32>
      %c0_21 = arith.constant 0 : index
      %c0_22 = arith.constant 0 : index
      %33 = vector.load %arg19[%c0_21, %c0_22] : memref<128x128xbf16, #tpu.memory_space<vmem>>, vector<128x128xbf16>
      %34 = arith.truncf %24 : vector<16x128xf32> to vector<16x128xbf16>
      %cst_23 = arith.constant dense<0.000000e+00> : vector<16x128xf32>
      %35 = tpu.matmul %34, %33, %cst_23 {dimension_numbers = #tpu.dot_dimension_numbers<[1], [0], [0], [1], [0, 0, 1, 1], [], []>} : vector<16x128xbf16>, vector<128x128xbf16>, vector<16x128xf32> -> vector<16x128xf32>
      %36 = arith.addf %32, %35 : vector<16x128xf32>
      %c0_24 = arith.constant 0 : index
      %c0_25 = arith.constant 0 : index
      %37 = vector.load %arg20[%c0_24, %c0_25] : memref<1x128xf32, #tpu.memory_space<vmem>>, vector<1x128xf32>
      %38 = vector.broadcast %37 : vector<1x128xf32> to vector<16x128xf32>
      %39 = arith.addf %36, %38 : vector<16x128xf32>
      %cst_26 = arith.constant 0.000000e+00 : f32
      %40 = vector.broadcast %cst_26 : f32 to vector<16x128xf32>
      %41 = arith.maximumf %39, %40 : vector<16x128xf32>
      %c0_27 = arith.constant 0 : index
      %c0_28 = arith.constant 0 : index
      %42 = vector.load %arg21[%c0_27, %c0_28] : memref<128x128xbf16, #tpu.memory_space<vmem>>, vector<128x128xbf16>
      %43 = arith.truncf %41 : vector<16x128xf32> to vector<16x128xbf16>
      %cst_29 = arith.constant dense<0.000000e+00> : vector<16x128xf32>
      %44 = tpu.matmul %43, %42, %cst_29 {dimension_numbers = #tpu.dot_dimension_numbers<[1], [0], [0], [1], [0, 0, 1, 1], [], []>} : vector<16x128xbf16>, vector<128x128xbf16>, vector<16x128xf32> -> vector<16x128xf32>
      %c0_30 = arith.constant 0 : index
      %c0_31 = arith.constant 0 : index
      %45 = vector.load %arg22[%c0_30, %c0_31] : memref<1x128xf32, #tpu.memory_space<vmem>>, vector<1x128xf32>
      %46 = vector.broadcast %45 : vector<1x128xf32> to vector<16x128xf32>
      %47 = arith.addf %44, %46 : vector<16x128xf32>
      %c0_32 = arith.constant 0 : index
      %c0_33 = arith.constant 0 : index
      %48 = vector.load %arg23[%c0_32, %c0_33] : memref<16x128xf32, #tpu.memory_space<vmem>>, vector<16x128xf32>
      tpu.vector_store %arg23[%c0_32, %c0_33], %47 {strides = array<i32>} : memref<16x128xf32, #tpu.memory_space<vmem>>, vector<16x128xf32>,
    } else {
    }
    return
  }
  func.func @transform_0(%arg0: i32, %arg1: i32, %arg2: memref<2xi32, #tpu.memory_space<smem>>, %arg3: memref<2xi32, #tpu.memory_space<smem>>) -> (i32, i32) {
    %0 = arith.index_cast %arg0 : i32 to index
    %1 = memref.load %arg2[%0] : memref<2xi32, #tpu.memory_space<smem>>
    %2 = arith.index_cast %arg0 : i32 to index
    %3 = memref.load %arg3[%2] : memref<2xi32, #tpu.memory_space<smem>>
    %c1_i32 = arith.constant 1 : i32
    %4 = arith.subi %3, %c1_i32 : i32
    %c0_i32 = arith.constant 0 : i32
    %5 = arith.maxsi %4, %c0_i32 : i32
    %6 = arith.minsi %arg1, %5 : i32
    %7 = arith.addi %1, %6 : i32
    %c0_i32_0 = arith.constant 0 : i32
    %c0_i32_1 = arith.constant 0 : i32
    return %c0_i32_0, %7 : i32, i32
  }
  func.func @transform_1(%arg0: i32, %arg1: i32, %arg2: memref<2xi32, #tpu.memory_space<smem>>, %arg3: memref<2xi32, #tpu.memory_space<smem>>) -> (i32, i32) {
    %0 = arith.index_cast %arg0 : i32 to index
    %1 = memref.load %arg2[%0] : memref<2xi32, #tpu.memory_space<smem>>
    %2 = arith.index_cast %arg0 : i32 to index
    %3 = memref.load %arg3[%2] : memref<2xi32, #tpu.memory_space<smem>>
    %c1_i32 = arith.constant 1 : i32
    %4 = arith.subi %3, %c1_i32 : i32
    %c0_i32 = arith.constant 0 : i32
    %5 = arith.maxsi %4, %c0_i32 : i32
    %6 = arith.minsi %arg1, %5 : i32
    %7 = arith.addi %1, %6 : i32
    %c0_i32_0 = arith.constant 0 : i32
    %c0_i32_1 = arith.constant 0 : i32
    return %7, %c0_i32_0 : i32, i32
  }
  func.func @transform_2(%arg0: i32, %arg1: i32, %arg2: memref<2xi32, #tpu.memory_space<smem>>, %arg3: memref<2xi32, #tpu.memory_space<smem>>) -> (i32, i32) {
    %0 = arith.index_cast %arg0 : i32 to index
    %1 = memref.load %arg2[%0] : memref<2xi32, #tpu.memory_space<smem>>
    %2 = arith.index_cast %arg0 : i32 to index
    %3 = memref.load %arg3[%2] : memref<2xi32, #tpu.memory_space<smem>>
    %c1_i32 = arith.constant 1 : i32
    %4 = arith.subi %3, %c1_i32 : i32
    %c0_i32 = arith.constant 0 : i32
    %5 = arith.maxsi %4, %c0_i32 : i32
    %6 = arith.minsi %arg1, %5 : i32
    %7 = arith.addi %1, %6 : i32
    %c0_i32_0 = arith.constant 0 : i32
    %c0_i32_1 = arith.constant 0 : i32
    return %7, %c0_i32_0 : i32, i32
  }
  func.func @transform_3(%arg0: i32, %arg1: i32, %arg2: memref<2xi32, #tpu.memory_space<smem>>, %arg3: memref<2xi32, #tpu.memory_space<smem>>) -> (i32, i32) {
    %c0_i32 = arith.constant 0 : i32
    %c0_i32_0 = arith.constant 0 : i32
    return %arg0, %c0_i32 : i32, i32
  }
  func.func @transform_4(%arg0: i32, %arg1: i32, %arg2: memref<2xi32, #tpu.memory_space<smem>>, %arg3: memref<2xi32, #tpu.memory_space<smem>>) -> (i32, i32) {
    %c0_i32 = arith.constant 0 : i32
    %c0_i32_0 = arith.constant 0 : i32
    return %arg0, %c0_i32 : i32, i32
  }
  func.func @transform_5(%arg0: i32, %arg1: i32, %arg2: memref<2xi32, #tpu.memory_space<smem>>, %arg3: memref<2xi32, #tpu.memory_space<smem>>) -> (i32, i32) {
    %c0_i32 = arith.constant 0 : i32
    %c0_i32_0 = arith.constant 0 : i32
    %c0_i32_1 = arith.constant 0 : i32
    return %c0_i32, %c0_i32_0 : i32, i32
  }
  func.func @transform_6(%arg0: i32, %arg1: i32, %arg2: memref<2xi32, #tpu.memory_space<smem>>, %arg3: memref<2xi32, #tpu.memory_space<smem>>) -> (i32, i32) {
    %c0_i32 = arith.constant 0 : i32
    %c0_i32_0 = arith.constant 0 : i32
    %c0_i32_1 = arith.constant 0 : i32
    return %c0_i32, %c0_i32_0 : i32, i32
  }
  func.func @transform_7(%arg0: i32, %arg1: i32, %arg2: memref<2xi32, #tpu.memory_space<smem>>, %arg3: memref<2xi32, #tpu.memory_space<smem>>) -> (i32, i32) {
    %c0_i32 = arith.constant 0 : i32
    %c0_i32_0 = arith.constant 0 : i32
    %c0_i32_1 = arith.constant 0 : i32
    return %c0_i32, %c0_i32_0 : i32, i32
  }
  func.func @transform_8(%arg0: i32, %arg1: i32, %arg2: memref<2xi32, #tpu.memory_space<smem>>, %arg3: memref<2xi32, #tpu.memory_space<smem>>) -> (i32, i32) {
    %c0_i32 = arith.constant 0 : i32
    %c0_i32_0 = arith.constant 0 : i32
    %c0_i32_1 = arith.constant 0 : i32
    return %c0_i32, %c0_i32_0 : i32, i32
  }
  func.func @transform_9(%arg0: i32, %arg1: i32, %arg2: memref<2xi32, #tpu.memory_space<smem>>, %arg3: memref<2xi32, #tpu.memory_space<smem>>) -> (i32, i32) {
    %c0_i32 = arith.constant 0 : i32
    %c0_i32_0 = arith.constant 0 : i32
    %c0_i32_1 = arith.constant 0 : i32
    return %c0_i32, %c0_i32_0 : i32, i32
  }
  func.func @transform_10(%arg0: i32, %arg1: i32, %arg2: memref<2xi32, #tpu.memory_space<smem>>, %arg3: memref<2xi32, #tpu.memory_space<smem>>) -> (i32, i32) {
    %c0_i32 = arith.constant 0 : i32
    %c0_i32_0 = arith.constant 0 : i32
    %c0_i32_1 = arith.constant 0 : i32
    return %c0_i32, %c0_i32_0 : i32, i32
  }
  func.func @transform_11(%arg0: i32, %arg1: i32, %arg2: memref<2xi32, #tpu.memory_space<smem>>, %arg3: memref<2xi32, #tpu.memory_space<smem>>) -> (i32, i32) {
    %c0_i32 = arith.constant 0 : i32
    %c0_i32_0 = arith.constant 0 : i32
    %c0_i32_1 = arith.constant 0 : i32
    return %c0_i32, %c0_i32_0 : i32, i32
  }
  func.func @transform_12(%arg0: i32, %arg1: i32, %arg2: memref<2xi32, #tpu.memory_space<smem>>, %arg3: memref<2xi32, #tpu.memory_space<smem>>) -> (i32, i32) {
    %c0_i32 = arith.constant 0 : i32
    %c0_i32_0 = arith.constant 0 : i32
    %c0_i32_1 = arith.constant 0 : i32
    return %c0_i32, %c0_i32_0 : i32, i32
  }
  func.func @transform_13(%arg0: i32, %arg1: i32, %arg2: memref<2xi32, #tpu.memory_space<smem>>, %arg3: memref<2xi32, #tpu.memory_space<smem>>) -> (i32, i32) {
    %c0_i32 = arith.constant 0 : i32
    %c0_i32_0 = arith.constant 0 : i32
    %c0_i32_1 = arith.constant 0 : i32
    return %c0_i32, %c0_i32_0 : i32, i32
  }
  func.func @transform_14(%arg0: i32, %arg1: i32, %arg2: memref<2xi32, #tpu.memory_space<smem>>, %arg3: memref<2xi32, #tpu.memory_space<smem>>) -> (i32, i32) {
    %c0_i32 = arith.constant 0 : i32
    %c0_i32_0 = arith.constant 0 : i32
    %c0_i32_1 = arith.constant 0 : i32
    return %c0_i32, %c0_i32_0 : i32, i32
  }
  func.func @transform_15(%arg0: i32, %arg1: i32, %arg2: memref<2xi32, #tpu.memory_space<smem>>, %arg3: memref<2xi32, #tpu.memory_space<smem>>) -> (i32, i32) {
    %c0_i32 = arith.constant 0 : i32
    %c0_i32_0 = arith.constant 0 : i32
    %c0_i32_1 = arith.constant 0 : i32
    return %c0_i32, %c0_i32_0 : i32, i32
  }
  func.func @transform_16(%arg0: i32, %arg1: i32, %arg2: memref<2xi32, #tpu.memory_space<smem>>, %arg3: memref<2xi32, #tpu.memory_space<smem>>) -> (i32, i32) {
    %c0_i32 = arith.constant 0 : i32
    %c0_i32_0 = arith.constant 0 : i32
    %c0_i32_1 = arith.constant 0 : i32
    return %c0_i32, %c0_i32_0 : i32, i32
  }
  func.func @transform_17(%arg0: i32, %arg1: i32, %arg2: memref<2xi32, #tpu.memory_space<smem>>, %arg3: memref<2xi32, #tpu.memory_space<smem>>) -> (i32, i32) {
    %c0_i32 = arith.constant 0 : i32
    %c0_i32_0 = arith.constant 0 : i32
    %c0_i32_1 = arith.constant 0 : i32
    return %c0_i32, %c0_i32_0 : i32, i32
  }
  func.func @transform_18(%arg0: i32, %arg1: i32, %arg2: memref<2xi32, #tpu.memory_space<smem>>, %arg3: memref<2xi32, #tpu.memory_space<smem>>) -> (i32, i32) {
    %c0_i32 = arith.constant 0 : i32
    %c0_i32_0 = arith.constant 0 : i32
    %c0_i32_1 = arith.constant 0 : i32
    return %c0_i32, %c0_i32_0 : i32, i32
  }
  func.func @transform_19(%arg0: i32, %arg1: i32, %arg2: memref<2xi32, #tpu.memory_space<smem>>, %arg3: memref<2xi32, #tpu.memory_space<smem>>) -> (i32, i32) {
    %c0_i32 = arith.constant 0 : i32
    %c0_i32_0 = arith.constant 0 : i32
    return %arg0, %c0_i32 : i32, i32
  }
}

</mosaic_0001>

<bundles_post_ra>
// kernel: tpu_custom_call.1
= control target key start
LH: loop header
LB: loop body
LE: loop exit
PB: predicated region body
PF: predicated region fallthrough
CT: control target
= control target key end

     0   :  { %s5431_s0 = inlined_call_operand.hbm [shape: s32[2], index: 0, kind: input, shape index: {}]   ;;  %s5432_s2 = inlined_call_operand.vmem [shape: s32[1,384], index: 2, kind: input, shape index: {}]   ;;  %s5433_s3 = inlined_call_operand.hbm [shape: bf16[384,128], index: 3, kind: input, shape index: {}]   ;;  %s5434_s4 = inlined_call_operand.hbm [shape: bf16[384,128], index: 4, kind: input, shape index: {}]   ;;  %s5435_s5 = inlined_call_operand.hbm [shape: bf16[32,128], index: 5, kind: input, shape index: {}]   ;;  %s5436_s6 = inlined_call_operand.vmem [shape: f32[32,1], index: 6, kind: input, shape index: {}]   ;;  %s5437_s7 = inlined_call_operand.hbm [shape: bf16[128,128], index: 7, kind: input, shape index: {}]   ;;  %s5438_s8 = inlined_call_operand.hbm [shape: f32[1,128], index: 8, kind: input, shape index: {}]   ;;  %s5439_s9 = inlined_call_operand.vmem [shape: bf16[128,128], index: 9, kind: input, shape index: {}]   ;;  %s5440_s10 = inlined_call_operand.vmem [shape: f32[1,128], index: 10, kind: input, shape index: {}]   ;;  %s5441_s11 = inlined_call_operand.hbm [shape: bf16[128,128], index: 11, kind: input, shape index: {}]   ;;  %s5442_s12 = inlined_call_operand.hbm [shape: bf16[128,128], index: 12, kind: input, shape index: {}]   ;;  %s5443_s13 = inlined_call_operand.vmem [shape: f32[1,128], index: 13, kind: input, shape index: {}]   ;;  %s5444_s14 = inlined_call_operand.hbm [shape: bf16[128,128], index: 14, kind: input, shape index: {}]   ;;  %s5445_s15 = inlined_call_operand.vmem [shape: f32[1,128], index: 15, kind: input, shape index: {}]   ;;  %s5446_s16 = inlined_call_operand.hbm [shape: bf16[128,128], index: 16, kind: input, shape index: {}]   ;;  %s5447_s17 = inlined_call_operand.hbm [shape: bf16[128,128], index: 17, kind: input, shape index: {}]   ;;  %s5448_s18 = inlined_call_operand.vmem [shape: f32[1,128], index: 18, kind: input, shape index: {}]   ;;  %s5449_s19 = inlined_call_operand.hbm [shape: bf16[128,128], index: 19, kind: input, shape index: {}]   ;;  %s5450_s20 = inlined_call_operand.vmem [shape: f32[1,128], index: 20, kind: input, shape index: {}]   ;;  %s5451_s21 = inlined_call_operand.hbm [shape: f32[32,128], index: 21, kind: output, shape index: {}]   ;;  %s5452_s1 = inlined_call_operand.hbm [shape: s32[2], index: 1, kind: input, shape index: {}]  }
   0x1   :  { %5490 = sst [smem:[#allocation58_spill]] %s5431_s0 }
   0x2   :  { %5491 = sst [smem:[#allocation59_spill]] %s5432_s2  ;;  %s5511_s26 = sld [smem:[#allocation58_spill]] }
   0x3   :  { %5492 = sst [smem:[#allocation60_spill]] %s5433_s3 }
   0x4   :  { %5493 = sst [smem:[#allocation61_spill]] %s5434_s4 }
   0x5   :  { %5494 = sst [smem:[#allocation62_spill]] %s5435_s5 }
   0x6   :  { %5495 = sst [smem:[#allocation63_spill]] %s5436_s6 }
   0x7   :  { %5496 = sst [smem:[#allocation64_spill]] %s5437_s7 }
   0x8   :  { %5497 = sst [smem:[#allocation65_spill]] %s5438_s8 }
   0x9   :  { %5498 = sst [smem:[#allocation66_spill]] %s5439_s9 }
   0xa   :  { %5499 = sst [smem:[#allocation67_spill]] %s5440_s10 }
   0xb   :  { %5500 = sst [smem:[#allocation68_spill]] %s5441_s11 }
   0xc   :  { %5501 = sst [smem:[#allocation69_spill]] %s5442_s12 }
   0xd   :  { %5502 = sst [smem:[#allocation70_spill]] %s5443_s13 }
   0xe   :  { %5503 = sst [smem:[#allocation71_spill]] %s5444_s14 }
   0xf   :  { %5504 = sst [smem:[#allocation72_spill]] %s5445_s15  ;;  %s3888_s15 = scalar_lea.hbm %s5511_s26, 16 }
  0x10   :  { %5505 = sst [smem:[#allocation73_spill]] %s5446_s16  ;;  %p3889_p0 = scmp.ne.s32.totalorder %s5511_s26, %s3888_s15 }
  0x11   :  { %5506 = sst [smem:[#allocation74_spill]] %s5447_s17  ;;  %p3892_p1 = scmp.lt.u32.totalorder %s3888_s15, %s5511_s26 }
  0x12   :  { %5507 = sst [smem:[#allocation75_spill]] %s5448_s18 }
  0x13   :  { %5508 = sst [smem:[#allocation76_spill]] %s5449_s19  ;;  %p3894_p2 = pnand %p3892_p1, %p3889_p0 }
  0x14   :  { %5509 = sst [smem:[#allocation77_spill]] %s5450_s20 }
  0x15   :  { %5510 = sst [smem:[#allocation78_spill]] %s5451_s21 }
  0x16   :  { %3897 = shalt.err (!%p3894_p2)  }
  0x17   :  { %s4396_s0 = smov [#allocation3]   ;;  %s3898_s23 = scalar_lea.hbm %s5452_s1, 16 }
  0x18   :  { %27 = dma.hbm_to_smem %s5511_s26, 16, %s4396_s0, [#allocation2] }
  0x19   :  { %p3899_p3 = scmp.ne.s32.totalorder %s5452_s1, %s3898_s23  ;;  %p3902_p4 = scmp.lt.u32.totalorder %s3898_s23, %s5452_s1 }
  0x1b   :  { %p3904_p5 = pnand %p3902_p4, %p3899_p3 }
  0x1d   :  { %3907 = shalt.err (!%p3904_p5)  }
  0x1e   :  { %s4397_s15 = smov [#allocation4]  }
  0x1f   :  { %29 = dma.hbm_to_smem %s5452_s1, 16, %s4397_s15, [#allocation2] }
  0x20   :  { %4306 = dma.done.wait [#allocation2], 32 }
  0x21   :  { %4307 = vsyncadd [#allocation2], 4294967264 }
  0x22   :  { %31 = sfence }
  0x23   :  { %32 = vsyncpa [#allocation6], 0 }
  0x24   :  { %34 = vsyncpa [#allocation6 + $0x1], 0 }
  0x25   :  { %35 = vsyncpa [#allocation9], 0 }
  0x26   :  { %37 = vsyncpa [#allocation9 + $0x1], 0 }
  0x27   :  { %38 = vsyncpa [#allocation12], 0 }
  0x28   :  { %39 = vsyncpa [#allocation15], 0 }
  0x29   :  { %40 = vsyncpa [#allocation18], 0 }
  0x2a   :  { %41 = vsyncpa [#allocation21], 0 }
  0x2b   :  { %42 = vsyncpa [#allocation7], 0 }
  0x2c   :  { %44 = vsyncpa [#allocation7 + $0x1], 0  ;;  %s4555_s26 = smov 0   ;;  %s4557_s28 = smov 0  }
  0x2d   :  { %s4559_s29 = smov 0   ;;  %s4561_s1 = smov 0  }
  0x2e   :  { %s4563_s0 = smov 0   ;;  %s4565_s5 = smov 0  }
  0x2f   :  { %s4567_s30 = smov 0   ;;  %s4569_s6 = smov 0  }
  0x30   :  { %s4571_s22 = smov 0   ;;  %s4573_s23 = smov 0  }
  0x31   :  { %s4575_s2 = smov 0   ;;  %s4577_s24 = smov 0  }
  0x32   :  { %s4579_s3 = smov 0   ;;  %s4581_s25 = smov 0  }
  0x33 LB: > { %5512 = sst [smem:[#allocation41_spill]] %s4342_s26  ;;  %s4626_s15 = sadd.s32 4294967295, %s4394_s25   ;;  %s4394_s25 = sphi %s4581_s25, %s50_s25   ;;  %s4390_s3 = sphi %s4579_s3, %s5633_s3   ;;  %s4386_s24 = sphi %s4577_s24, %s5638_s24   ;;  %s4382_s2 = sphi %s4575_s2, %s5631_s2   ;;  %s4378_s23 = sphi %s4573_s23, %s5637_s23   ;;  %s4374_s22 = sphi %s4571_s22, %s5630_s22   ;;  %s4370_s6 = sphi %s4569_s6, %s5629_s6   ;;  %s4366_s30 = sphi %s4567_s30, %s5628_s30   ;;  %s4362_s5 = sphi %s4565_s5, %s5627_s5   ;;  %s4358_s0 = sphi %s4563_s0, %s5626_s0   ;;  %s4354_s1 = sphi %s4561_s1, %s5625_s1   ;;  %s4350_s29 = sphi %s4559_s29, %s5636_s29   ;;  %s4346_s28 = sphi %s4557_s28, %s5624_s28   ;;  %s4342_s26 = sphi %s4555_s26, %s5635_s26  }
  0x34   : > { %5513 = sst [smem:[#allocation42_spill]] %s4346_s28  ;;  %p2954_p6 = scmp.ge.s32.totalorder %s4394_s25, 1 }
  0x35   : > { %5514 = sst [smem:[#allocation43_spill]] %s4350_s29  ;;  %p5466_p7 = scmp.eq.s32.totalorder %s4626_s15, 0 }
  0x36   : > { %5515 = sst [smem:[#allocation44_spill]] %s4358_s0  ;;  %p565_p8 = scmp.lt.s32.totalorder %s4394_s25, 5 }
  0x37   : > { %5516 = sst [smem:[#allocation45_spill]] %s4362_s5  ;;  %s4398_s4 = smov [#allocation11]  }
  0x38   : > { %5517 = sst [smem:[#allocation46_spill]] %s4366_s30  ;;  %p4631_p9 = pnand %p2954_p6, %p565_p8 }
  0x39   : > { %5518 = sst [smem:[#allocation47_spill]] %s4370_s6  ;;  %s577_s21 = sshll.u32 %s4398_s4, 4  ;;  %s4635_s21 = int_to_ptr.vmem [resolvable:$true] %s577_s21 }
  0x3a   : > { %5519 = sst [smem:[#allocation48_spill]] %s4374_s22  ;;  %p3592_p10 = pneg %p4631_p9 }
  0x3b   : > { %5520 = sst [smem:[#allocation49_spill]] %s4378_s23  ;;  %s4399_s18 = smov [#allocation14]  }
  0x3c   : > { %5521 = sst [smem:[#allocation50_spill]] %s4382_s2  ;;  %p4641_p11 = pnand %p3592_p10, %p5466_p7 }
  0x3d   : > { %5522 = sst [smem:[#allocation51_spill]] %s4390_s3  ;;  %s607_s13 = sshll.u32 %s4399_s18, 4  ;;  %s4645_s13 = int_to_ptr.vmem [resolvable:$true] %s607_s13 }
  0x3e   : > { %s5523_s27 = scalar_select %p4631_p9, 1, 0 }
  0x3f   : > { %s4400_s10 = smov [#allocation17]   ;;  %s5526_s7 = sld [smem:[#allocation64_spill]] }
  0x40   : > { %5524 = sst [smem:[#allocation52_spill]] %s5523_s27  ;;  %s4647_s9 = sshll.u32 %s4400_s10, 4  ;;  %s637_s9 = int_to_ptr.vmem [resolvable:$true] %s4647_s9 }
  0x41   : > { %p4657_p13 = pneg %p4641_p11 }
  0x45   : > { %s3908_s4 = scalar_lea.hbm %s5526_s7, 1024 }
  0x46   : > { %p3909_p12 = scmp.ne.s32.totalorder %s5526_s7, %s3908_s4  ;;  %p3915_p2 = scmp.lt.u32.totalorder %s3908_s4, %s5526_s7 }
  0x48   : > { %p3911_p0 = pnand %p4657_p13, %p3909_p12 }
  0x4a   : > { %p3912_p1 = pneg %p3911_p0 }
  0x4c   : > { %p3917_p3 = pnand %p3915_p2, %p3912_p1 }
  0x4e   : > { %3920 = shalt.err (!%p3917_p3)
}
  0x4f   : > { %s3921_s26 = scalar_lea.vmem %s4635_s21, 1024  ;;  %p3929_p8 = scmp.lt.s32.totalorder %s4635_s21, %s4635_s21 }
  0x50   : > { %p3922_p4 = scmp.ne.s32.totalorder %s4635_s21, %s3921_s26  ;;  %p3930_p10 = scmp.lt.s32.totalorder %s3921_s26, %s3921_s26 }
  0x52   : > { %p3924_p5 = pnand %p3922_p4, %p4657_p13  ;;  %p3931_p12 = por %p3930_p10, %p3929_p8 }
  0x54   : > { %p3925_p6 = pneg %p3924_p5 }
  0x56   : > { %p3932_p0 = pnand %p3931_p12, %p3925_p6 }
  0x58   : > { %3935 = shalt.err (!%p3932_p0)
}
  0x59   : > { %s5468_s23 = smov 64   ;;  %s5470_s2 = smov 4  }
  0x5a   : > { %3595 = dma.hbm_to_vmem [thread:$0]  (!%p4641_p11), %s5526_s7, 1024, %s4635_s21, [#allocation12], %s5468_s23, %s5468_s23, %s5470_s2  }
  0x5b   : > { %s5528_s11 = sld [smem:[#allocation68_spill]] }
  0x61   : > { %s3936_s26 = scalar_lea.hbm %s5528_s11, 1024 }
  0x62   : > { %p3937_p1 = scmp.ne.s32.totalorder %s5528_s11, %s3936_s26  ;;  %p3943_p4 = scmp.lt.u32.totalorder %s3936_s26, %s5528_s11 }
  0x64   : > { %p3939_p2 = pnand %p3937_p1, %p4657_p13 }
  0x66   : > { %p3940_p3 = pneg %p3939_p2 }
  0x68   : > { %p3945_p5 = pnand %p3943_p4, %p3940_p3 }
  0x6a   : > { %3948 = shalt.err (!%p3945_p5)
}
  0x6b   : > { %s3949_s21 = scalar_lea.vmem %s4645_s13, 1024  ;;  %p3957_p12 = scmp.lt.s32.totalorder %s4645_s13, %s4645_s13 }
  0x6c   : > { %p3950_p6 = scmp.ne.s32.totalorder %s4645_s13, %s3949_s21  ;;  %p3958_p0 = scmp.lt.s32.totalorder %s3949_s21, %s3949_s21 }
  0x6e   : > { %p3952_p8 = pnand %p3950_p6, %p4657_p13  ;;  %p3959_p1 = por %p3958_p0, %p3957_p12 }
  0x70   : > { %p3953_p10 = pneg %p3952_p8 }
  0x72   : > { %p3960_p2 = pnand %p3959_p1, %p3953_p10 }
  0x74   : > { %3963 = shalt.err (!%p3960_p2)
}
  0x75   : > { %3601 = dma.hbm_to_vmem [thread:$0]  (!%p4641_p11), %s5528_s11, 1024, %s4645_s13, [#allocation15], %s5468_s23, %s5468_s23, %s5470_s2  }
  0x76   : > { %s5529_s14 = sld [smem:[#allocation71_spill]] }
  0x7c   : > { %s3964_s27 = scalar_lea.hbm %s5529_s14, 1024 }
  0x7d   : > { %p3965_p3 = scmp.ne.s32.totalorder %s5529_s14, %s3964_s27  ;;  %p3971_p6 = scmp.lt.u32.totalorder %s3964_s27, %s5529_s14 }
  0x7f   : > { %p3967_p4 = pnand %p3965_p3, %p4657_p13 }
  0x81   : > { %p3968_p5 = pneg %p3967_p4 }
  0x83   : > { %p3973_p8 = pnand %p3971_p6, %p3968_p5 }
  0x85   : > { %3976 = shalt.err (!%p3973_p8)
}
  0x86   : > { %s3977_s21 = scalar_lea.vmem %s637_s9, 1024  ;;  %p3985_p1 = scmp.lt.s32.totalorder %s637_s9, %s637_s9 }
  0x87   : > { %p3978_p10 = scmp.ne.s32.totalorder %s637_s9, %s3977_s21  ;;  %p3986_p2 = scmp.lt.s32.totalorder %s3977_s21, %s3977_s21 }
  0x89   : > { %p3980_p12 = pnand %p3978_p10, %p4657_p13  ;;  %p3987_p7 = por %p3986_p2, %p3985_p1 }
  0x8b   : > { %p3981_p0 = pneg %p3980_p12 }
  0x8d   : > { %p3988_p9 = pnand %p3987_p7, %p3981_p0 }
  0x8f   : > { %3991 = shalt.err (!%p3988_p9)
}
  0x90   : > { %3607 = dma.hbm_to_vmem [thread:$0]  (!%p4641_p11), %s5529_s14, 1024, %s637_s9, [#allocation18], %s5468_s23, %s5468_s23, %s5470_s2  }
  0x91   : > { %s4403_s30 = smov [#allocation20]   ;;  %s5530_s17 = sld [smem:[#allocation74_spill]] }
  0x92   : > { %s665_s6 = sshll.u32 %s4403_s30, 4  ;;  %s666_s6 = int_to_ptr.vmem [resolvable:$true] %s665_s6 }
  0x97   : > { %s3992_s4 = scalar_lea.hbm %s5530_s17, 1024 }
  0x98   : > { %p3993_p7 = scmp.ne.s32.totalorder %s5530_s17, %s3992_s4  ;;  %p3999_p4 = scmp.lt.u32.totalorder %s3992_s4, %s5530_s17 }
  0x9a   : > { %p3995_p9 = pnand %p3993_p7, %p4657_p13 }
  0x9c   : > { %p3996_p3 = pneg %p3995_p9 }
  0x9e   : > { %p4001_p5 = pnand %p3999_p4, %p3996_p3 }
  0xa0   : > { %4004 = shalt.err (!%p4001_p5)
}
  0xa1   : > { %s4005_s9 = scalar_lea.vmem %s666_s6, 1024  ;;  %p4013_p12 = scmp.lt.s32.totalorder %s666_s6, %s666_s6 }
  0xa2   : > { %p4006_p6 = scmp.ne.s32.totalorder %s666_s6, %s4005_s9  ;;  %p4014_p0 = scmp.lt.s32.totalorder %s4005_s9, %s4005_s9 }
  0xa4   : > { %p4008_p8 = pnand %p4006_p6, %p4657_p13  ;;  %p4015_p1 = por %p4014_p0, %p4013_p12 }
  0xa6   : > { %p4009_p10 = pneg %p4008_p8 }
  0xa8   : > { %p4016_p2 = pnand %p4015_p1, %p4009_p10 }
  0xaa   : > { %4019 = shalt.err (!%p4016_p2)
}
  0xab   : > { %3613 = dma.hbm_to_vmem [thread:$0]  (!%p4641_p11), %s5530_s17, 1024, %s666_s6, [#allocation21], %s5468_s23, %s5468_s23, %s5470_s2  }
  0xac   : > { %s59_s30 = sadd.s32 1, %s4386_s24  ;;  %s62_s22 = sadd.s32 1, %s4390_s3 }
  0xad   : > { %p60_p7 = scmp.ge.s32.totalorder %s59_s30, 2  ;;  %p5478_p9 = scmp.eq.s32.totalorder %s4394_s25, 0 }
  0xae   : > { %s151_s27 = sld [smem:[#allocation4 + %s4390_s3]]  ;;  %p176_p3 = scmp.ne.s32.totalorder %s4362_s5, %s4358_s0 }
  0xaf   : > { %s5640_s30 = smov (%p60_p7, %s59_s30), 0  ;;  %s5642_s22 = smov (!%p60_p7, %s62_s22), %s4390_s3 }
  0xb0   : > { %5531 = sst [smem:[#allocation53_spill]] %s5640_s30  ;;  %p64_p4 = scmp.ge.s32.totalorder %s5642_s22, 2 }
  0xb1   : > { %s4758_s4 = sld [smem:[#allocation3 + %s4390_s3]]  ;;  %p182_p5 = scmp.ne.s32.totalorder %s4358_s0, %s4354_s1 }
  0xb2   : > { %p4767_p6 = por %p176_p3, %p5478_p9  ;;  %s5644_s22 = smov (%p64_p4, %s5642_s22), 0 }
  0xb3   : > { %5533 = sst [smem:[#allocation54_spill]] %s5644_s22  ;;  %p5534_p8 = scmp.eq.s32.totalorder %s4626_s15, 0 }
  0xb4   : > { %s2952_s10 = sadd.s32 4294967295, %s151_s27  ;;  %p5477_p0 = scmp.lt.s32.totalorder %s4394_s25, 4 }
  0xb5   : > { %p4775_p10 = por %p182_p5, %p5534_p8  ;;  %p153_p12 = scmp.gt.s32.totalorder %s2952_s10, 0 }
  0xb6   : > { %s159_s1 = sld [smem:[#allocation4 + %s5644_s22]]  ;;  %s751_s13 = sand.u32 1, %s4362_s5  }
  0xb7   : > { %s5535_s26 = scalar_select %p4775_p10, 1, 0 }
  0xb8   : > { %s5646_s10 = smov (!%p153_p12, %s2952_s10), 0  ;;  %s158_s9 = sld [smem:[#allocation3 + %s5644_s22]] }
  0xb9   : > { %5536 = sst [smem:[#allocation55_spill]] %s5535_s26  ;;  %p155_p1 = scmp.lt.s32.totalorder %s4386_s24, %s5646_s10 }
  0xba   : > { %s2968_s29 = sshll.u32 %s751_s13, 6  ;;  %p4790_p2 = pnand %p5477_p0, %p4767_p6 }
  0xbb   : > { %s156_s27 = scalar_select %p155_p1, %s4386_s24, %s5646_s10 }
  0xbc   : > { %s2953_s23 = sadd.s32 4294967295, %s159_s1  ;;  %s753_s21 = scalar_lea.vmem [#allocation8], %s2968_s29 }
  0xbd   : > { %s5537_s2 = scalar_select %p4790_p2, 1, 0 }
  0xbe   : > { %p161_p7 = scmp.gt.s32.totalorder %s2953_s23, 0  ;;  %s4794_s6 = sshll.u32 %s753_s21, 4  ;;  %s4919_s6 = int_to_ptr.vmem [resolvable:$true] %s4794_s6 }
  0xbf   : > { %s3565_s7 = scalar_select %p4767_p6, [#allocation3], [#allocation26] }
  0xc0   : > { %s5648_s23 = smov (!%p161_p7, %s2953_s23), 0  ;;  %s157_s1 = sadd.s32 %s156_s27, %s4758_s4 }
  0xc1   : > { %s3566_s10 = scalar_select %p4767_p6, %s4390_s3, 0 }
  0xc2   : > { %p163_p3 = scmp.lt.s32.totalorder %s5640_s30, %s5648_s23  ;;  %s5650_s7 = smov (!%p5477_p0, %s3565_s7), [#allocation30] }
  0xc3   : > { %s5652_s10 = smov (!%p5477_p0, %s3566_s10), 0  ;;  %s5538_s29 = sadd.s32 1, %s4362_s5 }
  0xc4   : > { %s164_s13 = scalar_select %p163_p3, %s5640_s30, %s5648_s23 }
  0xc5   : > { %s4808_s17 = sld [smem:[%s5650_s7 + %s5652_s10]]  ;;  %s4404_s4 = smov [#allocation13]  }
  0xc6   : > { %s165_s11 = sadd.s32 %s164_s13, %s158_s9  ;;  %s591_s27 = sshll.u32 %s4404_s4, 4  ;;  %s592_s27 = int_to_ptr.vmem [resolvable:$true] %s591_s27 }
  0xc7   : > { %s166_s14 = ssub.s32 %s157_s1, %s165_s11  ;;  %s5540_s8 = sld [smem:[#allocation65_spill]] }
  0xc8   : > { %p167_p4 = scmp.eq.s32.totalorder %s166_s14, 0 }
  0xc9   : > { %s3567_s21 = scalar_select %p4767_p6, [#allocation4], [#allocation27] }
  0xca   : > { %s4815_s26 = scalar_select %p167_p4, %s4362_s5, %s5538_s29  }
  0xcb   : > { %s5654_s21 = smov (!%p5477_p0, %s3567_s21), [#allocation31] }
  0xcc   : > { %5539 = sst [smem:[#allocation56_spill]] %s4815_s26 }
  0xcd   : > { %s4819_s0 = sld [smem:[%s5654_s21 + %s5652_s10]]  ;;  %s4020_s9 = scalar_lea.hbm %s5540_s8, 16 }
  0xce   : > { %p4021_p5 = scmp.ne.s32.totalorder %s5540_s8, %s4020_s9  ;;  %p4027_p12 = scmp.lt.u32.totalorder %s4020_s9, %s5540_s8 }
  0xd0   : > { %p4023_p6 = pnand %p4021_p5, %p4657_p13 }
  0xd2   : > { %p4024_p8 = pneg %p4023_p6 }
  0xd4   : > { %p4029_p1 = pnand %p4027_p12, %p4024_p8 }
  0xd6   : > { %4032 = shalt.err (!%p4029_p1)
}
  0xd7   : > { %s4033_s10 = scalar_lea.vmem %s592_s27, 16  ;;  %s4040_s30 = scalar_lea.vmem %s592_s27, 32 }
  0xd8   : > { %p4034_p7 = scmp.ne.s32.totalorder %s592_s27, %s4033_s10  ;;  %p4041_p0 = scmp.lt.s32.totalorder %s592_s27, %s592_s27 }
  0xd9   : > { %p4042_p9 = scmp.lt.s32.totalorder %s4040_s30, %s4033_s10 }
  0xda   : > { %p4036_p3 = pnand %p4034_p7, %p4657_p13 }
  0xdb   : > { %p4043_p10 = por %p4042_p9, %p4041_p0 }
  0xdc   : > { %p4037_p4 = pneg %p4036_p3 }
  0xde   : > { %p4044_p2 = pnand %p4043_p10, %p4037_p4 }
  0xe0   : > { %4047 = shalt.err (!%p4044_p2)
}
  0xe1   : > { %3598 = dma.hbm_to_vmem [thread:$0]  (!%p4641_p11), %s5540_s8, 16, %s592_s27, [#allocation12]  }
  0xe2   : > { %s4405_s21 = smov [#allocation16]   ;;  %s4406_s4 = smov [#allocation19]  }
  0xe3   : > { %s620_s29 = sshll.u32 %s4405_s21, 4  ;;  %s652_s23 = sshll.u32 %s4406_s4, 4  ;;  %s621_s29 = int_to_ptr.vmem [resolvable:$true] %s620_s29  ;;  %s653_s23 = int_to_ptr.vmem [resolvable:$true] %s652_s23 }
  0xe4   : > { %s5541_s12 = sld [smem:[#allocation69_spill]] }
  0xea   : > { %s4048_s7 = scalar_lea.hbm %s5541_s12, 1024 }
  0xeb   : > { %p4049_p9 = scmp.ne.s32.totalorder %s5541_s12, %s4048_s7  ;;  %p4055_p2 = scmp.lt.u32.totalorder %s4048_s7, %s5541_s12 }
  0xed   : > { %p4051_p10 = pnand %p4049_p9, %p4657_p13 }
  0xef   : > { %p4052_p0 = pneg %p4051_p10 }
  0xf1   : > { %p4057_p5 = pnand %p4055_p2, %p4052_p0 }
  0xf3   : > { %4060 = shalt.err (!%p4057_p5)
}
  0xf4   : > { %s4061_s27 = scalar_lea.vmem %s621_s29, 1024  ;;  %p4069_p1 = scmp.lt.s32.totalorder %s621_s29, %s621_s29 }
  0xf5   : > { %p4062_p6 = scmp.ne.s32.totalorder %s621_s29, %s4061_s27  ;;  %p4070_p7 = scmp.lt.s32.totalorder %s4061_s27, %s4061_s27 }
  0xf7   : > { %p4064_p8 = pnand %p4062_p6, %p4657_p13  ;;  %p4071_p3 = por %p4070_p7, %p4069_p1 }
  0xf9   : > { %p4065_p12 = pneg %p4064_p8 }
  0xfb   : > { %p4072_p4 = pnand %p4071_p3, %p4065_p12 }
  0xfd   : > { %4075 = shalt.err (!%p4072_p4)
}
  0xfe   : > { %s5542_s1 = smov 4   ;;  %s5543_s13 = smov 64  }
  0xff   : > { %3604 = dma.hbm_to_vmem [thread:$0]  (!%p4641_p11), %s5541_s12, 1024, %s621_s29, [#allocation15], %s5543_s13, %s5543_s13, %s5542_s1  }
 0x100   : > { %s2969_s9 = sadd.s32 4294967295, %s4819_s0  ;;  %s4407_s11 = smov [#allocation22]  }
 0x101   : > { %s681_s7 = sshll.u32 %s4407_s11, 4  ;;  %p4861_p9 = scmp.gt.s32.totalorder %s2969_s9, 0  ;;  %s4865_s7 = int_to_ptr.vmem [resolvable:$true] %s681_s7 }
 0x102   : > { %s5545_s16 = sld [smem:[#allocation73_spill]] }
 0x103   : > { %s5544_s14 = scalar_select %p4861_p9, 1, 0 }
 0x108   : > { %s4076_s30 = scalar_lea.hbm %s5545_s16, 1024 }
 0x109   : > { %p4077_p10 = scmp.ne.s32.totalorder %s5545_s16, %s4076_s30  ;;  %p4083_p5 = scmp.lt.u32.totalorder %s4076_s30, %s5545_s16 }
 0x10b   : > { %p4079_p0 = pnand %p4077_p10, %p4657_p13 }
 0x10d   : > { %p4080_p2 = pneg %p4079_p0 }
 0x10f   : > { %p4085_p6 = pnand %p4083_p5, %p4080_p2 }
 0x111   : > { %4088 = shalt.err (!%p4085_p6)
}
 0x112   : > { %s4089_s21 = scalar_lea.vmem %s653_s23, 1024  ;;  %p4097_p7 = scmp.lt.s32.totalorder %s653_s23, %s653_s23 }
 0x113   : > { %p4090_p8 = scmp.ne.s32.totalorder %s653_s23, %s4089_s21  ;;  %p4098_p3 = scmp.lt.s32.totalorder %s4089_s21, %s4089_s21 }
 0x115   : > { %p4092_p12 = pnand %p4090_p8, %p4657_p13  ;;  %p4099_p4 = por %p4098_p3, %p4097_p7 }
 0x117   : > { %p4093_p1 = pneg %p4092_p12 }
 0x119   : > { %p4100_p9 = pnand %p4099_p4, %p4093_p1 }
 0x11b   : > { %4103 = shalt.err (!%p4100_p9)
}
 0x11c   : > { %3610 = dma.hbm_to_vmem [thread:$0]  (!%p4641_p11), %s5545_s16, 1024, %s653_s23, [#allocation18], %s5543_s13, %s5543_s13, %s5542_s1  }
 0x11d   : > { %p5546_p10 = scmp.ne.s32.totalorder %s5544_s14, 0  ;;  %s5547_s19 = sld [smem:[#allocation76_spill]] }
 0x11f   : > { %s5656_s9 = smov (!%p5546_p10, %s2969_s9), 0 }
 0x123   : > { %s4104_s10 = scalar_lea.hbm %s5547_s19, 1024 }
 0x124   : > { %p4105_p9 = scmp.ne.s32.totalorder %s5547_s19, %s4104_s10  ;;  %p4111_p5 = scmp.lt.u32.totalorder %s4104_s10, %s5547_s19 }
 0x126   : > { %p4107_p0 = pnand %p4105_p9, %p4657_p13 }
 0x128   : > { %p4108_p2 = pneg %p4107_p0 }
 0x12a   : > { %p4113_p6 = pnand %p4111_p5, %p4108_p2 }
 0x12c   : > { %4116 = shalt.err (!%p4113_p6)
}
 0x12d   : > { %s4117_s23 = scalar_lea.vmem %s4865_s7, 1024  ;;  %p4125_p7 = scmp.lt.s32.totalorder %s4865_s7, %s4865_s7 }
 0x12e   : > { %p4118_p8 = scmp.ne.s32.totalorder %s4865_s7, %s4117_s23  ;;  %p4126_p3 = scmp.lt.s32.totalorder %s4117_s23, %s4117_s23 }
 0x130   : > { %p4120_p12 = pnand %p4118_p8, %p4657_p13  ;;  %p4127_p4 = por %p4126_p3, %p4125_p7 }
 0x132   : > { %p4121_p1 = pneg %p4120_p12 }
 0x134   : > { %p4128_p10 = pnand %p4127_p4, %p4121_p1 }
 0x136   : > { %4131 = shalt.err (!%p4128_p10)
}
 0x137   : > { %3616 = dma.hbm_to_vmem [thread:$0]  (!%p4641_p11), %s5547_s19, 1024, %s4865_s7, [#allocation21], %s5543_s13, %s5543_s13, %s5542_s1  }
 0x138   : > { %p759_p13 = scmp.lt.s32.totalorder %s4386_s24, %s5656_s9  ;;  %s5548_s18 = sld [smem:[#allocation61_spill]] }
 0x139   : > { %s4928_s30 = sld [smem:[#allocation4 + %s4390_s3]]  ;;  %s5549_s27 = sand.u32 1, %s4394_s25  }
 0x13a   : > { %s760_s28 = scalar_select %p759_p13, %s4386_s24, %s5656_s9 }
 0x13b   : > { %s4932_s0 = scalar_lea.sflag [#allocation9], %s5549_s27  ;;  %p5550_p9 = scmp.ne.s32.totalorder %s5537_s2, 0 }
 0x13c   : > { %s761_s20 = sadd.s32 %s760_s28, %s4808_s17 }
 0x13d   : > { %s3111_s8 = sshll.u32 %s761_s20, 10  ;;  %p4134_p0 = pneg %p5550_p9 }
 0x13e   : > { %s4925_s10 = scalar_lea.hbm %s5548_s18, %s3111_s8  ;;  %s4137_s29 = scalar_lea.hbm %s5548_s18, 3072 }
 0x13f   : > { %s4132_s7 = scalar_lea.hbm %s4925_s10, 1024  ;;  %p4138_p6 = scmp.lt.u32.totalorder %s4925_s10, %s5548_s18 }
 0x140   : > { %p4133_p11 = scmp.ne.s32.totalorder %s4925_s10, %s4132_s7  ;;  %p4139_p8 = scmp.lt.u32.totalorder %s4137_s29, %s4132_s7 }
 0x141   : > { %p4141_p1 = scmp.lt.u32.totalorder %s4132_s7, %s4925_s10 }
 0x142   : > { %p4135_p2 = pnand %p4134_p0, %p4133_p11  ;;  %p4140_p12 = por %p4139_p8, %p4138_p6 }
 0x144   : > { %p4136_p5 = pneg %p4135_p2  ;;  %p4142_p7 = por %p4141_p1, %p4140_p12 }
 0x146   : > { %p4143_p3 = pnand %p4142_p7, %p4136_p5 }
 0x148   : > { %4146 = shalt.err (!%p4143_p3)
}
 0x149   : > { %s4147_s21 = scalar_lea.vmem %s4919_s6, 1024  ;;  %s4408_s28 = smov [#allocation8]  }
 0x14a   : > { %p4148_p4 = scmp.ne.s32.totalorder %s4919_s6, %s4147_s21  ;;  %s4152_s20 = sshll.u32 %s4408_s28, 4  ;;  %s4153_s20 = int_to_ptr.vmem [resolvable:$false] %s4152_s20 }
 0x14b   : > { %s4154_s8 = scalar_lea.vmem %s4153_s20, 2048  ;;  %p4155_p11 = scmp.lt.s32.totalorder %s4919_s6, %s4153_s20 }
 0x14c   : > { %p4150_p10 = pnand %p4148_p4, %p4134_p0  ;;  %p4156_p2 = scmp.lt.s32.totalorder %s4154_s8, %s4147_s21 }
 0x14e   : > { %p4151_p13 = pneg %p4150_p10  ;;  %p4157_p6 = por %p4156_p2, %p4155_p11 }
 0x150   : > { %p4158_p8 = pnand %p4157_p6, %p4151_p13 }
 0x152   : > { %4161 = shalt.err (!%p4158_p8)
}
 0x153   : > { %s5551_s4 = sld [smem:[#allocation47_spill]]  ;;  %s5552_s11 = sld [smem:[#allocation48_spill]] }
 0x154   : > { %s5553_s27 = sld [smem:[#allocation46_spill]]  ;;  %s5554_s9 = sld [smem:[#allocation53_spill]] }
 0x155   : > { %3631 = dma.hbm_to_vmem [thread:$0]  (!%p5550_p9), %s4925_s10, 1024, %s4919_s6, %s4932_s0, %s5543_s13, %s5543_s13, %s5542_s1  }
 0x156   : > { %s108_s2 = sld [smem:[#allocation3 + %s4390_s3]]  ;;  %p5555_p12 = scmp.eq.s32.totalorder %s4394_s25, 0 }
 0x157   : > { %s117_s7 = sld [smem:[#allocation4 + %s5644_s22]]  ;;  %s2950_s21 = sadd.s32 4294967295, %s4928_s30 }
 0x158   : > { %s116_s17 = sld [smem:[#allocation3 + %s5644_s22]]  ;;  %p5557_p9 = scmp.eq.s32.totalorder %s4626_s15, 0 }
 0x159   : > { %p134_p0 = scmp.ne.s32.totalorder %s5552_s11, %s5551_s4  ;;  %s5481_s29 = sand.u32 1, %s5552_s11  }
 0x15a   : > { %p140_p5 = scmp.ne.s32.totalorder %s5551_s4, %s5553_s27  ;;  %s127_s23 = sadd.s32 1, %s5552_s11 }
 0x15b   : > { %p4974_p1 = por %p5555_p12, %p134_p0  ;;  %p111_p3 = scmp.gt.s32.totalorder %s2950_s21, 0 }
 0x15c   : > { %p4981_p7 = por %p5557_p9, %p140_p5  ;;  %s2964_s10 = sshll.u32 %s5481_s29, 6 }
 0x15d   : > { %s2951_s28 = sadd.s32 4294967295, %s117_s7  ;;  %s5658_s21 = smov (!%p111_p3, %s2950_s21), 0 }
 0x15e   : > { %s5558_s6 = scalar_select %p4981_p7, 1, 0 }
 0x15f   : > { %p119_p4 = scmp.gt.s32.totalorder %s2951_s28, 0  ;;  %p113_p10 = scmp.lt.s32.totalorder %s4386_s24, %s5658_s21 }
 0x160   : > { %s724_s20 = scalar_lea.vmem [#allocation5], %s2964_s10  ;;  %p5559_p11 = scmp.lt.s32.totalorder %s4394_s25, 4 }
 0x161   : > { %s4988_s30 = sshll.u32 %s724_s20, 4  ;;  %s5660_s28 = smov (!%p119_p4, %s2951_s28), 0  ;;  %s5055_s30 = int_to_ptr.vmem [resolvable:$true] %s4988_s30 }
 0x162   : > { %s114_s8 = scalar_select %p113_p10, %s4386_s24, %s5658_s21 }
 0x163   : > { %p121_p13 = scmp.lt.s32.totalorder %s5554_s9, %s5660_s28  ;;  %p4996_p2 = pnand %p5559_p11, %p4974_p1 }
 0x164   : > { %s115_s27 = sadd.s32 %s114_s8, %s108_s2  ;;  %s5561_s7 = sld [smem:[#allocation43_spill]] }
 0x165   : > { %s5662_s9 = smov (!%p121_p13, %s5554_s9), %s5660_s28  ;;  %s5562_s20 = sld [smem:[#allocation42_spill]] }
 0x166   : > { %s3560_s10 = scalar_select %p4974_p1, [#allocation3], [#allocation24] }
 0x167   : > { %s123_s29 = sadd.s32 %s5662_s9, %s116_s17  ;;  %s5563_s12 = sld [smem:[#allocation41_spill]] }
 0x168   : > { %s124_s21 = ssub.s32 %s115_s27, %s123_s29  ;;  %p5565_p8 = pmov %p5559_p11 }
 0x169   : > { %p125_p6 = scmp.eq.s32.totalorder %s124_s21, 0  ;;  %s2947_s9 = sadd.s32 4294967294, %s4394_s25  }
 0x16a   : > { %s3561_s16 = scalar_select %p4974_p1, %s4390_s3, 0 }
 0x16b   : > { %s5007_s18 = scalar_select %p125_p6, %s5552_s11, %s127_s23  }
 0x16c   : > { %s5664_s10 = smov (!%p5565_p8, %s3560_s10), [#allocation28]  ;;  %p5566_p0 = pmov %p5565_p8 }
 0x16d   : > { %5564 = sst [smem:[#allocation57_spill]] %s5007_s18  ;;  %s192_s29 = ssub.s32 %s4390_s3, %s5644_s22 }
 0x16e   : > { %s5666_s16 = smov (!%p5566_p0, %s3561_s16), 0  ;;  %p5567_p5 = pmov %p5566_p0 }
 0x16f   : > { %s3562_s2 = scalar_select %p4974_p1, [#allocation4], [#allocation25] }
 0x170   : > { %s5015_s28 = sld [smem:[%s5664_s10 + %s5666_s16]]  ;;  %s195_s8 = sadd.s32 1, %s5561_s7 }
 0x171   : > { %s5668_s2 = smov (!%p5567_p5, %s3562_s2), [#allocation29]  ;;  %p193_p12 = scmp.eq.s32.totalorder %s192_s29, 0 }
 0x172   : > { %s726_s17 = sld [smem:[%s5668_s2 + %s5666_s16]]  ;;  %p202_p9 = scmp.ne.s32.totalorder %s5561_s7, %s5562_s20 }
 0x173   : > { %p208_p3 = scmp.ne.s32.totalorder %s5562_s20, %s5563_s12  ;;  %p552_p4 = scmp.eq.s32.totalorder %s4626_s15, 3 }
 0x174   : > { %s5029_s23 = scalar_select %p193_p12, %s5561_s7, %s195_s8  }
 0x175   : > { %p5568_p10 = scmp.eq.s32.totalorder %s4394_s25, 0  ;;  %p5570_p13 = scmp.eq.s32.totalorder %s4626_s15, 0 }
 0x176   : > { %p5043_p6 = por %p552_p4, %p202_p9  ;;  %p558_p0 = scmp.eq.s32.totalorder %s2947_s9, 3 }
 0x177   : > { %p5033_p1 = por %p202_p9, %p5568_p10  ;;  %p5039_p11 = por %p208_p3, %p5570_p13 }
 0x178   : > { %s2965_s27 = sadd.s32 4294967295, %s726_s17  ;;  %s780_s10 = sand.u32 1, %s5561_s7  }
 0x179   : > { %s5571_s16 = scalar_select %p5039_p11, 1, 0 }
 0x17a   : > { %s5572_s12 = scalar_select %p5043_p6, 1, 0 }
 0x17b   : > { %p728_p8 = scmp.gt.s32.totalorder %s2965_s27, 0  ;;  %s3112_s20 = sshll.u32 %s4390_s3, 7 }
 0x17c   : > { %p5049_p5 = por %p558_p0, %p208_p3  ;;  %s2972_s2 = sshll.u32 %s780_s10, 3 }
 0x17d   : > { %s5670_s27 = smov (!%p728_p8, %s2965_s27), 0  ;;  %s782_s17 = scalar_lea.vmem [#allocation10], %s2972_s2 }
 0x17e   : > { %s5573_s21 = scalar_select %p5049_p5, 1, 0 }
 0x17f   : > { %p730_p12 = scmp.lt.s32.totalorder %s4386_s24, %s5670_s27  ;;  %s789_s29 = sshll.u32 %s782_s17, 4  ;;  %s5072_s29 = int_to_ptr.vmem [resolvable:$true] %s789_s29 }
 0x180   : > { %5574 = sst [smem:[#allocation46_spill]] %s5573_s21  ;;  %s5575_s9 = sld [smem:[#allocation62_spill]] }
 0x181   : > { %s731_s8 = scalar_select %p730_p12, %s4386_s24, %s5670_s27 }
 0x182   : > { %p5576_p9 = scmp.lt.s32.totalorder %s4394_s25, 4  ;;  %s5578_s2 = sld [smem:[#allocation60_spill]] }
 0x183   : > { %s732_s18 = sadd.s32 %s731_s8, %s5015_s28  ;;  %s5580_s27 = sand.u32 1, %s5552_s11  }
 0x184   : > { %p5067_p3 = pnand %p5576_p9, %p5033_p1  ;;  %s3110_s10 = sshll.u32 %s732_s18, 10 }
 0x185   : > { %s5081_s19 = scalar_lea.sflag [#allocation6], %s5580_s27  ;;  %p4164_p10 = pneg %p4996_p2 }
 0x186   : > { %s5061_s7 = scalar_lea.hbm %s5575_s9, %s3112_s20 }
 0x188   : > { %s5579_s21 = smov %s5578_s2  ;;  %s5077_s17 = scalar_lea.hbm %s5578_s2, %s3110_s10 }
 0x189   : > { %s4162_s22 = scalar_lea.hbm %s5077_s17, 1024  ;;  %s4167_s5 = scalar_lea.hbm %s5579_s21, 3072 }
 0x18a   : > { %p4163_p4 = scmp.ne.s32.totalorder %s5077_s17, %s4162_s22  ;;  %p4168_p8 = scmp.lt.u32.totalorder %s5077_s17, %s5579_s21 }
 0x18b   : > { %p4169_p0 = scmp.lt.u32.totalorder %s4167_s5, %s4162_s22  ;;  %p4171_p9 = scmp.lt.u32.totalorder %s4162_s22, %s5077_s17 }
 0x18c   : > { %p4165_p1 = pnand %p4164_p10, %p4163_p4 }
 0x18d   : > { %p4170_p12 = por %p4169_p0, %p4168_p8 }
 0x18e   : > { %p4166_p13 = pneg %p4165_p1 }
 0x18f   : > { %p4172_p5 = por %p4171_p9, %p4170_p12 }
 0x191   : > { %p4173_p6 = pnand %p4172_p5, %p4166_p13 }
 0x193   : > { %4176 = shalt.err (!%p4173_p6)
}
 0x194   : > { %s4177_s14 = scalar_lea.vmem %s5055_s30, 1024  ;;  %s4409_s20 = smov [#allocation5]  }
 0x195   : > { %p4178_p4 = scmp.ne.s32.totalorder %s5055_s30, %s4177_s14  ;;  %s4182_s8 = sshll.u32 %s4409_s20, 4  ;;  %s4183_s8 = int_to_ptr.vmem [resolvable:$false] %s4182_s8 }
 0x196   : > { %s4184_s10 = scalar_lea.vmem %s4183_s8, 2048  ;;  %p4185_p7 = scmp.lt.s32.totalorder %s5055_s30, %s4183_s8 }
 0x197   : > { %p4180_p1 = pnand %p4178_p4, %p4164_p10  ;;  %p4186_p8 = scmp.lt.s32.totalorder %s4184_s10, %s4177_s14 }
 0x199   : > { %p4181_p11 = pneg %p4180_p1  ;;  %p4187_p0 = por %p4186_p8, %p4185_p7 }
 0x19b   : > { %p4188_p12 = pnand %p4187_p0, %p4181_p11 }
 0x19d   : > { %4191 = shalt.err (!%p4188_p12)
}
 0x19e   : > { %3624 = dma.hbm_to_vmem [thread:$0]  (!%p4996_p2), %s5077_s17, 1024, %s5055_s30, %s5081_s19, %s5543_s13, %s5543_s13, %s5542_s1  }
 0x19f   : > { %s4192_s2 = scalar_lea.hbm %s5061_s7, 128  ;;  %p4194_p7 = pneg %p5067_p3 }
 0x1a0   : > { %p4193_p6 = scmp.ne.s32.totalorder %s5061_s7, %s4192_s2  ;;  %s4197_s22 = scalar_lea.hbm %s5575_s9, 256 }
 0x1a1   : > { %p4198_p10 = scmp.lt.u32.totalorder %s5061_s7, %s5575_s9  ;;  %p4199_p13 = scmp.lt.u32.totalorder %s4197_s22, %s4192_s2 }
 0x1a2   : > { %p4195_p11 = pnand %p4194_p7, %p4193_p6  ;;  %p4201_p4 = scmp.lt.u32.totalorder %s4192_s2, %s5061_s7 }
 0x1a3   : > { %p4200_p9 = por %p4199_p13, %p4198_p10 }
 0x1a4   : > { %p4196_p5 = pneg %p4195_p11 }
 0x1a5   : > { %p4202_p2 = por %p4201_p4, %p4200_p9 }
 0x1a7   : > { %p4203_p1 = pnand %p4202_p2, %p4196_p5 }
 0x1a9   : > { %4206 = shalt.err (!%p4203_p1)
}
 0x1aa   : > { %s4207_s30 = scalar_lea.vmem %s5072_s29, 128  ;;  %s4410_s17 = smov [#allocation10]  }
 0x1ab   : > { %p4208_p8 = scmp.ne.s32.totalorder %s5072_s29, %s4207_s30  ;;  %s4212_s19 = sshll.u32 %s4410_s17, 4  ;;  %s4213_s19 = int_to_ptr.vmem [resolvable:$false] %s4212_s19 }
 0x1ac   : > { %s4214_s5 = scalar_lea.vmem %s4213_s19, 256  ;;  %p4215_p6 = scmp.lt.s32.totalorder %s5072_s29, %s4213_s19 }
 0x1ad   : > { %p4210_p0 = pnand %p4208_p8, %p4194_p7  ;;  %p4216_p11 = scmp.lt.s32.totalorder %s4214_s5, %s4207_s30 }
 0x1af   : > { %p4211_p12 = pneg %p4210_p0  ;;  %p4217_p10 = por %p4216_p11, %p4215_p6 }
 0x1b1   : > { %p4218_p13 = pnand %p4217_p10, %p4211_p12 }
 0x1b3   : > { %4221 = shalt.err (!%p4218_p13)
}
 0x1b4   : > { %3634 = dma.hbm_to_vmem [thread:$0]  (!%p5067_p3), %s5061_s7, 128, %s5072_s29, %s4932_s0, %s5543_s13, %s5543_s13, %s5542_s1  }
 0x1b5   : > { %s5581_s26 = sld [smem:[#allocation52_spill]] }
 0x1bb   : > { %p5582_p7 = scmp.ne.s32.totalorder %s5581_s26, 0 }
 0x1bc   : > { %s5583_s11 = sld [smem:[#allocation47_spill]] (!%p5582_p7)  ;;  %p5584_p5 = scmp.ne.s32.totalorder (!%p5582_p7), %s5558_s6, 0 }
 0x1bd   : > { %810 = sbr.rel (%p5582_p7) target bundleno = 2639 (0xa4f), region = 96 }
 0x1c2   : > { %s812_s14 = sand.u32 (!%p5582_p7), 1, %s5583_s11  }
 0x1c3   : > { %s2976_s20 = sshll.u32 (!%p5582_p7), %s812_s14, 6  ;;  %s813_s8 = scalar_lea.sflag (!%p5582_p7), [#allocation6], %s812_s14 }
 0x1c4   : > { %s5144_s10 = scalar_lea.vmem [#allocation5], %s2976_s20 }
 0x1c5   : > { %4309 = dma.done.wait (%p5584_p5), %s813_s8, 1024  }
 0x1c6   : > { %4311 = vsyncadd (%p5584_p5), %s813_s8, 4294966272  ;;  %s5585_s3 = sld [smem:[#allocation44_spill]]  ;;  %s5586_s2 = sld [smem:[#allocation55_spill]] }
 0x1c7   : > { %s821_s4 = sand.u32 1, %s4626_s15  }
 0x1c8   : > { %s822_s0 = scalar_lea.sflag [#allocation9], %s821_s4 }
 0x1cc   : > { %s823_s1 = sand.u32 1, %s5585_s3   ;;  %p5587_p3 = scmp.ne.s32.totalorder %s5586_s2, 0 }
 0x1cd   : > { %s2977_s13 = sshll.u32 %s823_s1, 6 }
 0x1ce   : > { %s5152_s29 = scalar_lea.vmem [#allocation8], %s2977_s13 }
 0x1cf   : > { %4313 = dma.done.wait (%p5587_p3), %s822_s0, 1024  }
 0x1d0   : > { %4315 = vsyncadd (%p5587_p3), %s822_s0, 4294966272  ;;  %s5588_s7 = sld [smem:[#allocation42_spill]]  ;;  %p5589_p9 = scmp.ne.s32.totalorder %s5571_s16, 0 }
 0x1d6   : > { %s5159_s27 = sand.u32 1, %s5588_s7  }
 0x1d7   : > { %s2978_s6 = sshll.u32 %s5159_s27, 3 }
 0x1d8   : > { %s5162_s22 = scalar_lea.vmem [#allocation10], %s2978_s6 }
 0x1d9   : > { %4317 = dma.done.wait (%p5589_p9), %s822_s0, 128  }
 0x1da   : > { %4319 = vsyncadd (%p5589_p9), %s822_s0, 4294967168  ;;  %p5590_p4 = scmp.eq.s32.totalorder %s4626_s15, 0 }
 0x1dc   : > { %4321 = dma.done.wait (%p5590_p4), [#allocation12], 1040   ;;  %p5591_p2 = pmov %p5590_p4 }
 0x1de   : > { %4323 = vsyncadd (%p5591_p2), [#allocation12], 4294966256  ;;  %p5592_p1 = pmov %p5591_p2 }
 0x1e0   : > { %4325 = dma.done.wait (%p5592_p1), [#allocation15], 2048   ;;  %p5593_p8 = pmov %p5592_p1 }
 0x1e1   : > { %p5594_p0 = pmov %p5592_p1 }
 0x1e2   : > { %4327 = vsyncadd (%p5593_p8), [#allocation15], 4294965248 }
 0x1e3   : > { %4329 = dma.done.wait (%p5594_p0), [#allocation18], 2048   ;;  %p5595_p12 = pmov %p5594_p0 }
 0x1e4   : > { %p5596_p6 = pmov %p5594_p0 }
 0x1e5   : > { %4331 = vsyncadd (%p5595_p12), [#allocation18], 4294965248 }
 0x1e6   : > { %4333 = dma.done.wait (%p5596_p6), [#allocation21], 2048   ;;  %p5597_p11 = pmov %p5594_p0 }
 0x1e7   : > { %s5598_s16 = sld [smem:[#allocation50_spill]]  ;;  %s5599_s18 = sld [smem:[#allocation49_spill]] }
 0x1e8   : > { %4335 = vsyncadd (%p5597_p11), [#allocation21], 4294965248  ;;  %s2987_s28 = sshll.u32 %s5159_s27, 4  ;;  %s5600_s14 = sld [smem:[#allocation63_spill]] }
 0x1e9   : > { %s5601_s1 = sld [smem:[#allocation59_spill]]  ;;  %s5201_s0 = scalar_lea.vmem [#allocation23], %s2987_s28 }
 0x1ed   : > { %s2989_s30 = sshll.u32 %s5598_s16, 1  ;;  %s948_s17 = sld [smem:[#allocation4 + %s5598_s16]] }
 0x1ee   : > { %p986_p10 = scmp.lt.s32.totalorder %s2989_s30, 3  ;;  %s947_s15 = sld [smem:[#allocation3 + %s5598_s16]] }
 0x1ef   : > { %p2991_p3 = scmp.ne.s32.totalorder %s5599_s18, 0 }
 0x1f0   : > { %s5672_s30 = smov (!%p986_p10, %s2989_s30), 3  ;;  %v4411_v0 = vmov (!%p2991_p3), 0.0  }
 0x1f1   : > { %s2990_s19 = sshll.u32 %s5672_s30, 3  ;;  %997 = vst [vmem:[%s5201_s0] sm:$0xff] (!%p2991_p3), %v4411_v0  ;;  %998 = vst [vmem:[%s5201_s0 + $0x8] sm:$0xff] (!%p2991_p3), %v4411_v0 }
 0x1f2   : > { %s5190_s20 = scalar_lea.vmem %s5600_s14, %s2990_s19 }
 0x1f3   : > { %s2988_s5 = sadd.s32 4294967295, %s948_s17 }
 0x1f4   : > { %p950_p13 = scmp.gt.s32.totalorder %s2988_s5, 0 }
 0x1f6   : > { %s5674_s5 = smov (!%p950_p13, %s2988_s5), 0 }
 0x1f7   : > { %p952_p7 = scmp.lt.s32.totalorder %s5599_s18, %s5674_s5 }
 0x1f9   : > { %s953_s8 = scalar_select %p952_p7, %s5599_s18, %s5674_s5 }
 0x1fa   : > { %996 = sbr.rel (%p2991_p3) target bundleno = 513 (0x201), region = 144 }
 0x1fb   : > { %s954_s3 = sadd.s32 %s953_s8, %s947_s15 }
 0x1fc   : > { %p955_p5 = scmp.lt.s32.totalorder %s954_s3, 2 }
 0x1fe   : > { %s5676_s3 = smov (!%p955_p5, %s954_s3), 2 }
 0x1ff   : > { %s957_s13 = scalar_lea.vmem %s5601_s1, %s5676_s3 }
 0x201 PF: > { %s5602_s7 = sld [smem:[#allocation50_spill]]  ;;  %s5603_s16 = sld [smem:[#allocation49_spill]] }
 0x207   : > { %s999_s6 = sld [smem:[#allocation4 + %s5602_s7]] }
 0x20d   : > { %p2992_p9 = scmp.ge.s32.totalorder %s5603_s16, %s999_s6 }
 0x20e   : > { %v3790_v1 = vld [vmem:[#allocation11] sm:$0xff] (!%p2992_p9)   ;;  %v3791_v2 = vld [vmem:[#allocation11 + $0x8] sm:$0xff] (!%p2992_p9)   ;;  %v3792_v3 = vld [vmem:[#allocation11 + $0x10] sm:$0xff] (!%p2992_p9)   ;;  %s5604_s30 = sld [smem:[#allocation66_spill]] (!%p2992_p9)  ;;  %s5606_s28 = sld [smem:[#allocation67_spill]] (!%p2992_p9)  ;;  %vm4413_vm0 = vmmov (!%p2992_p9), 0  }
 0x20f   : > { %1003 = sbr.rel (%p2992_p9) target bundleno = 1690 (0x69a), region = 148  ;;  %3248 = vmatprep.subr.bf16.mxu0 (!%p2992_p9), %v3790_v1  ;;  %v3793_v4 = vld [vmem:[#allocation11 + $0x18] sm:$0xff] (!%p2992_p9)   ;;  %v3798_v5 = vld [vmem:[%s5144_s10] sm:$0xff] (!%p2992_p9)   ;;  %v3794_v6 = vld [vmem:[#allocation11 + $0x20] sm:$0xff] (!%p2992_p9)   ;;  %s5607_s5 = sld [smem:[#allocation70_spill]] (!%p2992_p9) }
 0x210   : > { %3249 = vmatpush3.bf16.msra.mxu0 (!%p2992_p9), %v3790_v1  ;;  %3264 = vmatprep.mubr.bf16.mxu0 (!%p2992_p9), %v3798_v5  ;;  %v3795_v7 = vld [vmem:[#allocation11 + $0x28] sm:$0xff] (!%p2992_p9)   ;;  %v3796_v10 = vld [vmem:[#allocation11 + $0x30] sm:$0xff] (!%p2992_p9)   ;;  %v3797_v12 = vld [vmem:[#allocation11 + $0x38] sm:$0xff] (!%p2992_p9)   ;;  %s5608_s14 = sld [smem:[#allocation72_spill]] (!%p2992_p9)  ;;  %s5609_s15 = sld [smem:[#allocation50_spill]] (!%p2992_p9) }
 0x211   : > { %3250 = vmatprep.subr.bf16.mxu0 (!%p2992_p9), %v3791_v2  ;;  %v3799_v15 = vld [vmem:[%s5144_s10 + $0x8] sm:$0xff] (!%p2992_p9)   ;;  %v3800_v16 = vld [vmem:[%s5144_s10 + $0x10] sm:$0xff] (!%p2992_p9)   ;;  %v3801_v18 = vld [vmem:[%s5144_s10 + $0x18] sm:$0xff] (!%p2992_p9)  }
 0x212   : > { %v3802_v19 = vld [vmem:[%s5144_s10 + $0x20] sm:$0xff] (!%p2992_p9)   ;;  %v3803_v20 = vld [vmem:[%s5144_s10 + $0x28] sm:$0xff] (!%p2992_p9)   ;;  %v3804_v21 = vld [vmem:[%s5144_s10 + $0x30] sm:$0xff] (!%p2992_p9)  }
 0x213   : > { %v3805_v22 = vld [vmem:[%s5144_s10 + $0x38] sm:$0xff] (!%p2992_p9)   ;;  %v3822_v27 = vld [vmem:[%s5152_s29] sm:$0xff] (!%p2992_p9)   ;;  %v3817_v29 = vld [vmem:[#allocation16 + $0x18] sm:$0xff] (!%p2992_p9)  }
 0x214   : > { %3251 = vmatpush3.bf16.msra.mxu0 (!%p2992_p9), %v3791_v2  ;;  %s5605_s17 = smov (!%p2992_p9), %s5604_s30  ;;  %v3806_v8 = vld [vmem:[%s5604_s30] sm:$0xff] (!%p2992_p9)   ;;  %v3814_v25 = vld [vmem:[#allocation16] sm:$0xff] (!%p2992_p9)   ;;  %v3821_v33 = vld [vmem:[#allocation16 + $0x38] sm:$0xff] (!%p2992_p9)  }
 0x215   : > { %3252 = vmatprep.subr.bf16.mxu0 (!%p2992_p9), %v3792_v3  ;;  %v3807_v9 = vld [vmem:[%s5605_s17 + $0x8] sm:$0xff] (!%p2992_p9)   ;;  %3280 = vmatprep.subr.bf16.mxu1 (!%p2992_p9), %v3806_v8  ;;  %v3808_v11 = vld [vmem:[%s5605_s17 + $0x10] sm:$0xff] (!%p2992_p9)   ;;  %v3809_v13 = vld [vmem:[%s5605_s17 + $0x18] sm:$0xff] (!%p2992_p9)  }
 0x216   : > { %3281 = vmatpush3.bf16.msra.mxu1 %v3806_v8  ;;  %v3810_v14 = vld [vmem:[%s5605_s17 + $0x20] sm:$0xff]   ;;  %v3811_v17 = vld [vmem:[%s5605_s17 + $0x28] sm:$0xff]   ;;  %v3812_v23 = vld [vmem:[%s5605_s17 + $0x30] sm:$0xff]   ;;  %s3053_s8 = sshll.u32 %s5609_s15, 4 }
 0x217   : > { %3282 = vmatprep.subr.bf16.mxu1 %v3807_v9  ;;  %v3813_v24 = vld [vmem:[%s5605_s17 + $0x38] sm:$0xff]   ;;  %v3816_v28 = vld [vmem:[#allocation16 + $0x10] sm:$0xff]   ;;  %v3826_v36 = vld [vmem:[%s5152_s29 + $0x10] sm:$0xff]  }
 0x218   : > { %3253 = vmatpush3.bf16.msra.mxu0 %v3792_v3  ;;  %v3815_v26 = vld [vmem:[#allocation16 + $0x8] sm:$0xff]   ;;  %v3818_v30 = vld [vmem:[#allocation16 + $0x20] sm:$0xff]   ;;  %v3820_v32 = vld [vmem:[#allocation16 + $0x30] sm:$0xff]  }
 0x219   : > { %3254 = vmatprep.subr.bf16.mxu0 %v3793_v4  ;;  %v3819_v31 = vld [vmem:[#allocation16 + $0x28] sm:$0xff]   ;;  %v3824_v34 = vld [vmem:[#allocation14] sm:$0xff]   ;;  %v3823_v35 = vld [vmem:[%s5152_s29 + $0x8] sm:$0xff]  }
 0x21a   : > { %3283 = vmatpush3.bf16.msra.mxu1 %v3807_v9  ;;  %v3825_v37 = vld [vmem:[#allocation14 + $0x8] sm:$0xff]   ;;  %v3828_v38 = vld [vmem:[#allocation14 + $0x10] sm:$0xff]   ;;  %v3829_v41 = vld [vmem:[#allocation14 + $0x18] sm:$0xff]  }
 0x21b   : > { %3284 = vmatprep.subr.bf16.mxu1 %v3808_v11  ;;  %v3827_v39 = vld [vmem:[%s5152_s29 + $0x18] sm:$0xff]   ;;  %v3830_v40 = vld [vmem:[%s5152_s29 + $0x20] sm:$0xff]   ;;  %v3831_v43 = vld [vmem:[%s5152_s29 + $0x28] sm:$0xff]  }
 0x21c   : > { %3255 = vmatpush3.bf16.msra.mxu0 %v3793_v4  ;;  %v3832_v42 = vld [vmem:[#allocation14 + $0x20] sm:$0xff]   ;;  %v3833_v44 = vld [vmem:[#allocation14 + $0x28] sm:$0xff]   ;;  %v2993_v45 = vld [vmem:[#allocation13] ss:$0 sm:$0xff] }
 0x21d   : > { %3256 = vmatprep.subr.bf16.mxu0 %v3794_v6 }
 0x21e   : > { %3285 = vmatpush3.bf16.msra.mxu1 %v3808_v11 }
 0x21f   : > { %3286 = vmatprep.subr.bf16.mxu1 %v3809_v13 }
 0x220   : > { %3257 = vmatpush3.bf16.msra.mxu0 %v3794_v6 }
 0x221   : > { %3258 = vmatprep.subr.bf16.mxu0 %v3795_v7 }
 0x222   : > { %3287 = vmatpush3.bf16.msra.mxu1 %v3809_v13 }
 0x223   : > { %3288 = vmatprep.subr.bf16.mxu1 %v3810_v14 }
 0x224   : > { %3259 = vmatpush3.bf16.msra.mxu0 %v3795_v7 }
 0x225   : > { %3260 = vmatprep.subr.bf16.mxu0 %v3796_v10 }
 0x226   : > { %3289 = vmatpush3.bf16.msra.mxu1 %v3810_v14 }
 0x227   : > { %3290 = vmatprep.subr.bf16.mxu1 %v3811_v17 }
 0x228   : > { %3261 = vmatpush3.bf16.msra.mxu0 %v3796_v10 }
 0x229   : > { %3262 = vmatprep.subr.bf16.mxu0 %v3797_v12 }
 0x22a   : > { %3291 = vmatpush3.bf16.msra.mxu1 %v3811_v17 }
 0x22b   : > { %3292 = vmatprep.subr.bf16.mxu1 %v3812_v23 }
 0x22c   : > { %3263 = vmatpush3.bf16.msra.mxu0 %v3797_v12 }
 0x22d   : > { %3312 = vmatprep.subr.bf16.mxu0 %v3814_v25 }
 0x22e   : > { %3293 = vmatpush3.bf16.msra.mxu1 %v3812_v23 }
 0x22f   : > { %3265 = vmatmul.mubr.bf16.vlgmr.msra.gmra.mrb[0].mxu0 %v3799_v15  ;;  %3294 = vmatprep.subr.bf16.mxu1 %v3813_v24 }
 0x230   : > { %3268 = vmatprep.mubr.bf16.mxu0 %v3800_v16  ;;  %3313 = vmatpush3.bf16.msra.mxu0 %v3814_v25 }
 0x231   : > { %3314 = vmatprep.subr.bf16.mxu0 %v3815_v26 }
 0x232   : > { %3295 = vmatpush3.bf16.msra.mxu1 %v3813_v24 }
 0x234   : > { %3315 = vmatpush3.bf16.msra.mxu0 %v3815_v26 }
 0x235   : > { %3316 = vmatprep.subr.bf16.mxu0 %v3816_v28 }
 0x237   : > { %3269 = vmatmul.mubr.bf16.gmra.mrb[4].mxu0 %v3801_v18 }
 0x238   : > { %3272 = vmatprep.mubr.bf16.mxu0 %v3802_v19  ;;  %3317 = vmatpush3.bf16.msra.mxu0 %v3816_v28 }
 0x239   : > { %3318 = vmatprep.subr.bf16.mxu0 %v3817_v29 }
 0x23c   : > { %3319 = vmatpush3.bf16.msra.mxu0 %v3817_v29 }
 0x23d   : > { %3320 = vmatprep.subr.bf16.mxu0 %v3818_v30 }
 0x23f   : > { %3273 = vmatmul.mubr.bf16.gmra.mrb[8].mxu0 %v3803_v20 }
 0x240   : > { %3276 = vmatprep.mubr.bf16.mxu0 %v3804_v21  ;;  %3321 = vmatpush3.bf16.msra.mxu0 %v3818_v30 }
 0x241   : > { %3322 = vmatprep.subr.bf16.mxu0 %v3819_v31 }
 0x244   : > { %3323 = vmatpush3.bf16.msra.mxu0 %v3819_v31 }
 0x245   : > { %3324 = vmatprep.subr.bf16.mxu0 %v3820_v32 }
 0x247   : > { %3277 = vmatmul.mubr.bf16.gmra.mrb[12].mxu0 %v3805_v22 }
 0x248   : > { %3328 = vmatprep.mubr.bf16.mxu0 %v3822_v27  ;;  %3325 = vmatpush3.bf16.msra.mxu0 %v3820_v32 }
 0x249   : > { %3326 = vmatprep.subr.bf16.mxu0 %v3821_v33 }
 0x24c   : > { %3327 = vmatpush3.bf16.msra.mxu0 %v3821_v33 }
 0x24d   : > { %3344 = vmatprep.subr.bf16.mxu0 %v3824_v34 }
 0x24f   : > { %3329 = vmatmul.mubr.bf16.vlgmr.msra.gmra.mrb[16].mxu0 %v3823_v35 }
 0x250   : > { %3345 = vmatpush3.bf16.msra.mxu0 %v3824_v34  ;;  %3332 = vmatprep.mubr.bf16.mxu0 %v3826_v36 }
 0x251   : > { %3346 = vmatprep.subr.bf16.mxu0 %v3825_v37 }
 0x254   : > { %3347 = vmatpush3.bf16.msra.mxu0 %v3825_v37 }
 0x255   : > { %3348 = vmatprep.subr.bf16.mxu0 %v3828_v38 }
 0x257   : > { %3333 = vmatmul.mubr.bf16.gmra.mrb[20].mxu0 %v3827_v39  ;;  %v3835_v39 = vld [vmem:[%s5152_s29 + $0x38] sm:$0xff]  }
 0x258   : > { %3349 = vmatpush3.bf16.msra.mxu0 %v3828_v38  ;;  %3336 = vmatprep.mubr.bf16.mxu0 %v3830_v40  ;;  %v3834_v38 = vld [vmem:[%s5152_s29 + $0x30] sm:$0xff]   ;;  %v3836_v40 = vld [vmem:[#allocation14 + $0x30] sm:$0xff]  }
 0x259   : > { %3350 = vmatprep.subr.bf16.mxu0 %v3829_v41 }
 0x25c   : > { %3351 = vmatpush3.bf16.msra.mxu0 %v3829_v41  ;;  %v3837_v41 = vld [vmem:[#allocation14 + $0x38] sm:$0xff]  }
 0x25d   : > { %3352 = vmatprep.subr.bf16.mxu0 %v3832_v42 }
 0x25f   : > { %3337 = vmatmul.mubr.bf16.gmra.mrb[24].mxu0 %v3831_v43  ;;  %v3839_v43 = vld [vmem:[#allocation17 + $0x8] sm:$0xff]  }
 0x260   : > { %3353 = vmatpush3.bf16.msra.mxu0 %v3832_v42  ;;  %3340 = vmatprep.mubr.bf16.mxu0 %v3834_v38  ;;  %v3838_v42 = vld [vmem:[#allocation17] sm:$0xff]  }
 0x261   : > { %3354 = vmatprep.subr.bf16.mxu0 %v3833_v44  ;;  %3376 = vmatprep.subr.bf16.mxu1 %v3838_v42 }
 0x264   : > { %3355 = vmatpush3.bf16.msra.mxu0 %v3833_v44  ;;  %v3840_v44 = vld [vmem:[#allocation17 + $0x10] sm:$0xff]  }
 0x265   : > { %3356 = vmatprep.subr.bf16.mxu0 %v3836_v40 }
 0x267   : > { %3341 = vmatmul.mubr.bf16.gmra.mrb[28].mxu0 %v3835_v39 }
 0x268   : > { %3357 = vmatpush3.bf16.msra.mxu0 %v3836_v40 }
 0x269   : > { %3358 = vmatprep.subr.bf16.mxu0 %v3837_v41 }
 0x26c   : > { %3359 = vmatpush3.bf16.msra.mxu0 %v3837_v41 }
 0x302   : > { %v3266_v46 = vpop.f32.mrb[0].mxu0 }
 0x303   : > { %v1199_v47 = vadd.f32 %v3266_v46, %v2993_v45  ;;  %v1190_v48 = vpop.f32.mrb[1].mxu0  ;;  %v3842_v46 = vld [vmem:[#allocation17 + $0x20] sm:$0xff]  }
 0x304   : > { %v1191_v49 = vadd.f32 %v2993_v45, %v1190_v48  ;;  %v3267_v50 = vpop.f32.mrb[2].mxu0 }
 0x305   : > { %v1202_v51 = vadd.f32 %v3267_v50, %v2993_v45  ;;  %v1193_v52 = vpop.f32.mrb[3].mxu0  ;;  %v1255_v54 = vmax.f32 %v1199_v47, 0.0  ;;  %v3843_v47 = vld [vmem:[#allocation17 + $0x28] sm:$0xff]  }
 0x306   : > { %v1194_v53 = vadd.f32 %v2993_v45, %v1193_v52  ;;  %v1253_v56 = vmax.f32 %v1191_v49, 0.0  ;;  %v3010_v49 = vld [vmem:[%s5606_s28] ss:$0 sm:$0xff] }
 0x307   : > { %v1256_v55 = vmax.f32 %v1202_v51, 0.0 }
 0x308   : > { %v1254_v57 = vmax.f32 %v1194_v53, 0.0 }
 0x309   : > { %v1270_v58 = vpack.c.bf16 %v1256_v55, %v1255_v54 }
 0x30a   : > { %v3270_v59 = vpop.f32.mrb[4].mxu0  ;;  %v1269_v60 = vpack.c.bf16 %v1254_v57, %v1253_v56 }
 0x30b   : > { %v1215_v61 = vadd.f32 %v3270_v59, %v2993_v45  ;;  %v1206_v62 = vpop.f32.mrb[5].mxu0 }
 0x30c   : > { %v1207_v63 = vadd.f32 %v2993_v45, %v1206_v62  ;;  %v3271_v0 = vpop.f32.mrb[6].mxu0  ;;  %3296 = vmatprep.mubr.bf16.mxu1 %v1269_v60 }
 0x30d   : > { %v1218_v1 = vadd.f32 %v3271_v0, %v2993_v45  ;;  %v1209_v2 = vpop.f32.mrb[7].mxu0  ;;  %3297 = vmatmul.mubr.bf16.vlgmr.msra.gmra.mrb[0].mxu1 %v1270_v58  ;;  %v1259_v4 = vmax.f32 %v1215_v61, 0.0 }
 0x30e   : > { %v1210_v3 = vadd.f32 %v2993_v45, %v1209_v2  ;;  %v1257_v6 = vmax.f32 %v1207_v63, 0.0  ;;  %3377 = vmatpush3.bf16.msra.mxu1 %v3838_v42 }
 0x30f   : > { %v1260_v5 = vmax.f32 %v1218_v1, 0.0  ;;  %3378 = vmatprep.subr.bf16.mxu1 %v3839_v43 }
 0x310   : > { %v1258_v7 = vmax.f32 %v1210_v3, 0.0 }
 0x311   : > { %v1272_v8 = vpack.c.bf16 %v1260_v5, %v1259_v4 }
 0x312   : > { %v1271_v9 = vpack.c.bf16 %v1258_v7, %v1257_v6  ;;  %v3274_v10 = vpop.f32.mrb[8].mxu0  ;;  %3379 = vmatpush3.bf16.msra.mxu1 %v3839_v43 }
 0x313   : > { %v1231_v11 = vadd.f32 %v3274_v10, %v2993_v45  ;;  %v1222_v12 = vpop.f32.mrb[9].mxu0  ;;  %3380 = vmatprep.subr.bf16.mxu1 %v3840_v44 }
 0x314   : > { %v1223_v13 = vadd.f32 %v2993_v45, %v1222_v12  ;;  %v3275_v14 = vpop.f32.mrb[10].mxu0  ;;  %3300 = vmatprep.mubr.bf16.mxu1 %v1271_v9 }
 0x315   : > { %v1234_v15 = vadd.f32 %v3275_v14, %v2993_v45  ;;  %v1225_v16 = vpop.f32.mrb[11].mxu0  ;;  %3301 = vmatmul.mubr.bf16.gmra.mrb[4].mxu1 %v1272_v8  ;;  %v1263_v18 = vmax.f32 %v1231_v11, 0.0 }
 0x316   : > { %v1226_v17 = vadd.f32 %v2993_v45, %v1225_v16  ;;  %v1261_v20 = vmax.f32 %v1223_v13, 0.0  ;;  %3381 = vmatpush3.bf16.msra.mxu1 %v3840_v44 }
 0x317   : > { %v1264_v19 = vmax.f32 %v1234_v15, 0.0 }
 0x318   : > { %v1262_v21 = vmax.f32 %v1226_v17, 0.0 }
 0x319   : > { %v1274_v22 = vpack.c.bf16 %v1264_v19, %v1263_v18 }
 0x31a   : > { %v1273_v23 = vpack.c.bf16 %v1262_v21, %v1261_v20  ;;  %v3278_v24 = vpop.f32.mrb[12].mxu0 }
 0x31b   : > { %v1247_v25 = vadd.f32 %v3278_v24, %v2993_v45  ;;  %v1238_v26 = vpop.f32.mrb[13].mxu0 }
 0x31c   : > { %v1239_v27 = vadd.f32 %v2993_v45, %v1238_v26  ;;  %v3279_v28 = vpop.f32.mrb[14].mxu0  ;;  %3304 = vmatprep.mubr.bf16.mxu1 %v1273_v23  ;;  %v3845_v26 = vld [vmem:[#allocation17 + $0x38] sm:$0xff]  }
 0x31d   : > { %v1250_v29 = vadd.f32 %v3279_v28, %v2993_v45  ;;  %v1241_v30 = vpop.f32.mrb[15].mxu0  ;;  %3305 = vmatmul.mubr.bf16.gmra.mrb[8].mxu1 %v1274_v22  ;;  %v1267_v32 = vmax.f32 %v1247_v25, 0.0  ;;  %v3844_v25 = vld [vmem:[#allocation17 + $0x30] sm:$0xff]  }
 0x31e   : > { %v1242_v31 = vadd.f32 %v2993_v45, %v1241_v30  ;;  %v1265_v34 = vmax.f32 %v1239_v27, 0.0  ;;  %v3841_v45 = vld [vmem:[#allocation17 + $0x18] sm:$0xff]   ;;  %v3043_v27 = vld [vmem:[%s5607_s5] ss:$0 sm:$0xff] }
 0x31f   : > { %v1268_v33 = vmax.f32 %v1250_v29, 0.0  ;;  %3382 = vmatprep.subr.bf16.mxu1 %v3841_v45 }
 0x320   : > { %v1266_v35 = vmax.f32 %v1242_v31, 0.0  ;;  %3383 = vmatpush3.bf16.msra.mxu1 %v3841_v45 }
 0x321   : > { %v1276_v36 = vpack.c.bf16 %v1268_v33, %v1267_v32  ;;  %3384 = vmatprep.subr.bf16.mxu1 %v3842_v46 }
 0x322   : > { %v1275_v37 = vpack.c.bf16 %v1266_v35, %v1265_v34 }
 0x324   : > { %3308 = vmatprep.mubr.bf16.mxu1 %v1275_v37  ;;  %3385 = vmatpush3.bf16.msra.mxu1 %v3842_v46 }
 0x325   : > { %3309 = vmatmul.mubr.bf16.gmra.mrb[12].mxu1 %v1276_v36  ;;  %3386 = vmatprep.subr.bf16.mxu1 %v3843_v47 }
 0x328   : > { %3387 = vmatpush3.bf16.msra.mxu1 %v3843_v47 }
 0x329   : > { %3388 = vmatprep.subr.bf16.mxu1 %v3844_v25 }
 0x32c   : > { %3389 = vmatpush3.bf16.msra.mxu1 %v3844_v25 }
 0x32d   : > { %3390 = vmatprep.subr.bf16.mxu1 %v3845_v26 }
 0x330   : > { %3391 = vmatpush3.bf16.msra.mxu1 %v3845_v26 }
 0x3e0   : > { %v3298_v48 = vpop.f32.mrb[0].mxu1 }
 0x3e1   : > { %v1365_v50 = vpop.f32.mrb[1].mxu1  ;;  %v1374_v52 = vadd.f32 %v3298_v48, %v3010_v49 }
 0x3e2   : > { %v3299_v51 = vpop.f32.mrb[2].mxu1  ;;  %v1366_v55 = vadd.f32 %v3010_v49, %v1365_v50 }
 0x3e3   : > { %v1377_v53 = vadd.f32 %v3299_v51, %v3010_v49  ;;  %v1368_v54 = vpop.f32.mrb[3].mxu1 }
 0x3e4   : > { %v1369_v56 = vadd.f32 %v3010_v49, %v1368_v54 }
 0x3e5   : > { %v1445_v57 = vpack.c.bf16 %v1377_v53, %v1374_v52 }
 0x3e6   : > { %v1444_v58 = vpack.c.bf16 %v1369_v56, %v1366_v55 }
 0x3e8   : > { %v3302_v59 = vpop.f32.mrb[4].mxu1  ;;  %3360 = vmatprep.mubr.bf16.mxu0 %v1444_v58 }
 0x3e9   : > { %v1381_v60 = vpop.f32.mrb[5].mxu1  ;;  %3361 = vmatmul.mubr.bf16.vlgmr.msra.gmra.mrb[16].mxu0 %v1445_v57  ;;  %v1390_v62 = vadd.f32 %v3302_v59, %v3010_v49 }
 0x3ea   : > { %v3303_v61 = vpop.f32.mrb[6].mxu1  ;;  %v1382_v1 = vadd.f32 %v3010_v49, %v1381_v60 }
 0x3eb   : > { %v1393_v63 = vadd.f32 %v3303_v61, %v3010_v49  ;;  %v1384_v0 = vpop.f32.mrb[7].mxu1 }
 0x3ec   : > { %v1385_v2 = vadd.f32 %v3010_v49, %v1384_v0 }
 0x3ed   : > { %v1447_v3 = vpack.c.bf16 %v1393_v63, %v1390_v62 }
 0x3ee   : > { %v1446_v4 = vpack.c.bf16 %v1385_v2, %v1382_v1 }
 0x3f0   : > { %v3306_v5 = vpop.f32.mrb[8].mxu1  ;;  %3364 = vmatprep.mubr.bf16.mxu0 %v1446_v4 }
 0x3f1   : > { %v1397_v6 = vpop.f32.mrb[9].mxu1  ;;  %3365 = vmatmul.mubr.bf16.gmra.mrb[20].mxu0 %v1447_v3  ;;  %v1406_v8 = vadd.f32 %v3306_v5, %v3010_v49 }
 0x3f2   : > { %v3307_v7 = vpop.f32.mrb[10].mxu1  ;;  %v1398_v11 = vadd.f32 %v3010_v49, %v1397_v6 }
 0x3f3   : > { %v1409_v9 = vadd.f32 %v3307_v7, %v3010_v49  ;;  %v1400_v10 = vpop.f32.mrb[11].mxu1 }
 0x3f4   : > { %v1401_v12 = vadd.f32 %v3010_v49, %v1400_v10 }
 0x3f5   : > { %v1449_v13 = vpack.c.bf16 %v1409_v9, %v1406_v8 }
 0x3f6   : > { %v1448_v14 = vpack.c.bf16 %v1401_v12, %v1398_v11 }
 0x3f8   : > { %v3310_v15 = vpop.f32.mrb[12].mxu1  ;;  %3368 = vmatprep.mubr.bf16.mxu0 %v1448_v14 }
 0x3f9   : > { %v1413_v16 = vpop.f32.mrb[13].mxu1  ;;  %3369 = vmatmul.mubr.bf16.gmra.mrb[24].mxu0 %v1449_v13  ;;  %v1422_v18 = vadd.f32 %v3310_v15, %v3010_v49 }
 0x3fa   : > { %v3311_v17 = vpop.f32.mrb[14].mxu1  ;;  %v1414_v21 = vadd.f32 %v3010_v49, %v1413_v16 }
 0x3fb   : > { %v1425_v19 = vadd.f32 %v3311_v17, %v3010_v49  ;;  %v1416_v20 = vpop.f32.mrb[15].mxu1 }
 0x3fc   : > { %v1417_v22 = vadd.f32 %v3010_v49, %v1416_v20  ;;  %v4412_v20 = vmov 0.0  }
 0x3fd   : > { %v1451_v23 = vpack.c.bf16 %v1425_v19, %v1422_v18  ;;  %3408 = vmatprep.subr.bf16.mxu1 %v4412_v20 }
 0x3fe   : > { %v1450_v24 = vpack.c.bf16 %v1417_v22, %v1414_v21  ;;  %v3044_v22 = vld [vmem:[%s5608_s14] ss:$0 sm:$0xff] }
 0x400   : > { %3372 = vmatprep.mubr.bf16.mxu0 %v1450_v24 }
 0x401   : > { %3373 = vmatmul.mubr.bf16.gmra.mrb[28].mxu0 %v1451_v23 }
 0x4bc   : > { %v3362_v28 = vpop.f32.mrb[16].mxu0 }
 0x4bd   : > { %v1831_v29 = vadd.f32 %v3362_v28, %v3043_v27  ;;  %v1759_v30 = vpop.f32.mrb[17].mxu0 }
 0x4be   : > { %v1829_v31 = vadd.f32 %v3043_v27, %v1759_v30  ;;  %v3363_v32 = vpop.f32.mrb[18].mxu0 }
 0x4bf   : > { %v1832_v33 = vadd.f32 %v3363_v32, %v3043_v27  ;;  %v1762_v34 = vpop.f32.mrb[19].mxu0  ;;  %v1847_v36 = vmax.f32 %v1831_v29, 0.0 }
 0x4c0   : > { %v1830_v35 = vadd.f32 %v3043_v27, %v1762_v34  ;;  %v1845_v38 = vmax.f32 %v1829_v31, 0.0 }
 0x4c1   : > { %v1848_v37 = vmax.f32 %v1832_v33, 0.0 }
 0x4c2   : > { %v1846_v39 = vmax.f32 %v1830_v35, 0.0 }
 0x4c3   : > { %v1878_v40 = vpack.c.bf16 %v1848_v37, %v1847_v36 }
 0x4c4   : > { %v1877_v41 = vpack.c.bf16 %v1846_v39, %v1845_v38  ;;  %v3366_v42 = vpop.f32.mrb[20].mxu0 }
 0x4c5   : > { %v1835_v43 = vadd.f32 %v3366_v42, %v3043_v27  ;;  %v1775_v44 = vpop.f32.mrb[21].mxu0 }
 0x4c6   : > { %v1833_v45 = vadd.f32 %v3043_v27, %v1775_v44  ;;  %v3367_v46 = vpop.f32.mrb[22].mxu0  ;;  %3392 = vmatprep.mubr.bf16.mxu1 %v1877_v41  ;;  %v2037_v44 = vlaneseq }
 0x4c7   : > { %v1836_v47 = vadd.f32 %v3367_v46, %v3043_v27  ;;  %v1778_v48 = vpop.f32.mrb[23].mxu0  ;;  %3393 = vmatmul.mubr.bf16.vlgmr.msra.gmra.mrb[16].mxu1 %v1878_v40  ;;  %v1851_v50 = vmax.f32 %v1835_v43, 0.0 }
 0x4c8   : > { %v1834_v49 = vadd.f32 %v3043_v27, %v1778_v48  ;;  %v1849_v52 = vmax.f32 %v1833_v45, 0.0 }
 0x4c9   : > { %v1852_v51 = vmax.f32 %v1836_v47, 0.0 }
 0x4ca   : > { %v1850_v53 = vmax.f32 %v1834_v49, 0.0 }
 0x4cb   : > { %v1880_v54 = vpack.c.bf16 %v1852_v51, %v1851_v50 }
 0x4cc   : > { %v1879_v55 = vpack.c.bf16 %v1850_v53, %v1849_v52  ;;  %v3370_v56 = vpop.f32.mrb[24].mxu0  ;;  %v2038_v52 = vshrl.u32 %v2037_v44, 7 }
 0x4cd   : > { %v1839_v57 = vadd.f32 %v3370_v56, %v3043_v27  ;;  %v1791_v58 = vpop.f32.mrb[25].mxu0 }
 0x4ce   : > { %v1837_v59 = vadd.f32 %v3043_v27, %v1791_v58  ;;  %v3371_v60 = vpop.f32.mrb[26].mxu0  ;;  %3396 = vmatprep.mubr.bf16.mxu1 %v1879_v55  ;;  %v2039_v56 = vadd.s32 8, %v2038_v52  ;;  %v2041_v58 = vstv %s3053_s8 }
 0x4cf   : > { %v1840_v61 = vadd.f32 %v3371_v60, %v3043_v27  ;;  %v1794_v62 = vpop.f32.mrb[27].mxu0  ;;  %3397 = vmatmul.mubr.bf16.gmra.mrb[20].mxu1 %v1880_v54  ;;  %v1855_v0 = vmax.f32 %v1839_v57, 0.0 }
 0x4d0   : > { %v1838_v63 = vadd.f32 %v3043_v27, %v1794_v62  ;;  %v1853_v2 = vmax.f32 %v1837_v59, 0.0 }
 0x4d1   : > { %v1856_v1 = vmax.f32 %v1840_v61, 0.0 }
 0x4d2   : > { %v1854_v3 = vmax.f32 %v1838_v63, 0.0 }
 0x4d3   : > { %v1882_v4 = vpack.c.bf16 %v1856_v1, %v1855_v0  ;;  %v2042_v1 = vadd.s32 %v2041_v58, %v2038_v52 }
 0x4d4   : > { %v1881_v5 = vpack.c.bf16 %v1854_v3, %v1853_v2  ;;  %v3374_v6 = vpop.f32.mrb[28].mxu0  ;;  %v2043_v2 = vadd.s32 %v2041_v58, %v2039_v56 }
 0x4d5   : > { %v1843_v7 = vadd.f32 %v3374_v6, %v3043_v27  ;;  %v1807_v8 = vpop.f32.mrb[29].mxu0  ;;  %v2056_v6 = vld [vmem:[%s5201_s0] sm:$0xff] }
 0x4d6   : > { %v1841_v9 = vadd.f32 %v3043_v27, %v1807_v8  ;;  %v3375_v10 = vpop.f32.mrb[30].mxu0  ;;  %3400 = vmatprep.mubr.bf16.mxu1 %v1881_v5  ;;  %v4414_v5 = vmov 1.0|1.0   ;;  %v2057_v8 = vld [vmem:[%s5201_s0 + $0x8] sm:$0xff] }
 0x4d7   : > { %v1844_v11 = vadd.f32 %v3375_v10, %v3043_v27  ;;  %v1810_v12 = vpop.f32.mrb[31].mxu0  ;;  %3401 = vmatmul.mubr.bf16.gmra.mrb[24].mxu1 %v1882_v4  ;;  %v1859_v14 = vmax.f32 %v1843_v7, 0.0  ;;  %v3054_v4 = vld [vmem:[%s957_s13] ss:$0 sm:$0xff] }
 0x4d8   : > { %v1842_v13 = vadd.f32 %v3043_v27, %v1810_v12  ;;  %v1857_v16 = vmax.f32 %v1841_v9, 0.0  ;;  %vm2049_vm1 = vcmp.eq.s32.totalorder %v2042_v1, %v3054_v4  ;;  %vm2050_vm2 = vcmp.eq.s32.totalorder %v2043_v2, %v3054_v4 }
 0x4d9   : > { %v1860_v15 = vmax.f32 %v1844_v11, 0.0  ;;  %vm3057_vm3 = vmpackc.low %vm2050_vm2, %vm2049_vm1 }
 0x4da   : > { %v1858_v17 = vmax.f32 %v1842_v13, 0.0 }
 0x4db   : > { %v1884_v18 = vpack.c.bf16 %v1860_v15, %v1859_v14 }
 0x4dc   : > { %v1883_v19 = vpack.c.bf16 %v1858_v17, %v1857_v16 }
 0x4de   : > { %3404 = vmatprep.mubr.bf16.mxu1 %v1883_v19 }
 0x4df   : > { %3405 = vmatmul.mubr.bf16.gmra.mrb[28].mxu1 %v1884_v18 }
 0x4e0   : > { %3424 = vmatprep.mubr.msk.bf16.mxu1 %vm4413_vm0, %v4412_v20 }
 0x59a   : > { %v3394_v21 = vpop.f32.mrb[16].mxu1 }
 0x59b   : > { %v1974_v23 = vpop.f32.mrb[17].mxu1  ;;  %v1983_v25 = vadd.f32 %v3394_v21, %v3044_v22 }
 0x59c   : > { %v3395_v24 = vpop.f32.mrb[18].mxu1  ;;  %v1975_v28 = vadd.f32 %v3044_v22, %v1974_v23 }
 0x59d   : > { %v1986_v26 = vadd.f32 %v3395_v24, %v3044_v22  ;;  %v1977_v27 = vpop.f32.mrb[19].mxu1 }
 0x59e   : > { %v1978_v29 = vadd.f32 %v3044_v22, %v1977_v27 }
 0x59f   : > { %v2059_v30 = vpack.c.bf16 %v1986_v26, %v1983_v25 }
 0x5a0   : > { %v2058_v31 = vpack.c.bf16 %v1978_v29, %v1975_v28 }
 0x5a2   : > { %v3398_v32 = vpop.f32.mrb[20].mxu1  ;;  %3409 = vmatpush3.bf16.msra.mxu1 %v2058_v31 }
 0x5a3   : > { %v1990_v33 = vpop.f32.mrb[21].mxu1  ;;  %3410 = vmatprep.subr.bf16.mxu1 %v4412_v20  ;;  %v1999_v35 = vadd.f32 %v3398_v32, %v3044_v22 }
 0x5a4   : > { %v3399_v34 = vpop.f32.mrb[22].mxu1  ;;  %v1991_v38 = vadd.f32 %v3044_v22, %v1990_v33 }
 0x5a5   : > { %v2002_v36 = vadd.f32 %v3399_v34, %v3044_v22  ;;  %v1993_v37 = vpop.f32.mrb[23].mxu1 }
 0x5a6   : > { %v1994_v39 = vadd.f32 %v3044_v22, %v1993_v37  ;;  %3411 = vmatpush3.bf16.msra.mxu1 %v2059_v30 }
 0x5a7   : > { %v2061_v40 = vpack.c.bf16 %v2002_v36, %v1999_v35  ;;  %3412 = vmatprep.subr.bf16.mxu1 %v4412_v20 }
 0x5a8   : > { %v2060_v41 = vpack.c.bf16 %v1994_v39, %v1991_v38 }
 0x5aa   : > { %v3402_v42 = vpop.f32.mrb[24].mxu1  ;;  %3413 = vmatpush3.bf16.msra.mxu1 %v2060_v41 }
 0x5ab   : > { %v2006_v43 = vpop.f32.mrb[25].mxu1  ;;  %3414 = vmatprep.subr.bf16.mxu1 %v4412_v20  ;;  %v2015_v46 = vadd.f32 %v3402_v42, %v3044_v22 }
 0x5ac   : > { %v3403_v45 = vpop.f32.mrb[26].mxu1  ;;  %v2007_v49 = vadd.f32 %v3044_v22, %v2006_v43 }
 0x5ad   : > { %v2018_v47 = vadd.f32 %v3403_v45, %v3044_v22  ;;  %v2009_v48 = vpop.f32.mrb[27].mxu1 }
 0x5ae   : > { %v2010_v50 = vadd.f32 %v3044_v22, %v2009_v48  ;;  %3415 = vmatpush3.bf16.msra.mxu1 %v2061_v40 }
 0x5af   : > { %v2063_v51 = vpack.c.bf16 %v2018_v47, %v2015_v46  ;;  %3416 = vmatprep.subr.bf16.mxu1 %v4412_v20 }
 0x5b0   : > { %v2062_v53 = vpack.c.bf16 %v2010_v50, %v2007_v49 }
 0x5b2   : > { %v3406_v54 = vpop.f32.mrb[28].mxu1  ;;  %3417 = vmatpush3.bf16.msra.mxu1 %v2062_v53 }
 0x5b3   : > { %v2022_v55 = vpop.f32.mrb[29].mxu1  ;;  %3418 = vmatprep.subr.bf16.mxu1 %v4412_v20  ;;  %v2031_v59 = vadd.f32 %v3406_v54, %v3044_v22 }
 0x5b4   : > { %v3407_v57 = vpop.f32.mrb[30].mxu1  ;;  %v2023_v62 = vadd.f32 %v3044_v22, %v2022_v55 }
 0x5b5   : > { %v2034_v60 = vadd.f32 %v3407_v57, %v3044_v22  ;;  %v2025_v61 = vpop.f32.mrb[31].mxu1 }
 0x5b6   : > { %v2026_v63 = vadd.f32 %v3044_v22, %v2025_v61  ;;  %3419 = vmatpush3.bf16.msra.mxu1 %v2063_v51 }
 0x5b7   : > { %v2065_v0 = vpack.c.bf16 %v2034_v60, %v2031_v59  ;;  %3420 = vmatprep.subr.bf16.mxu1 %v4412_v20 }
 0x5b8   : > { %v2064_v3 = vpack.c.bf16 %v2026_v63, %v2023_v62 }
 0x5ba   : > { %3421 = vmatpush3.bf16.msra.mxu1 %v2064_v3 }
 0x5bb   : > { %3422 = vmatprep.subr.bf16.mxu1 %v4412_v20 }
 0x5be   : > { %3423 = vmatpush3.bf16.msra.mxu1 %v2065_v0 }
 0x5c1   : > { %3425 = vmatmul.mubr.msk.bf16.vlgmr.msra.gmra.mrb[32].mxu1 %vm3057_vm3, %v4414_v5 }
 0x694   : > { %v2100_v7 = vpop.f32.mrb[32].mxu1 }
 0x695   : > { %v2107_v9 = vadd.f32 %v2100_v7, %v2056_v6  ;;  %v3426_v10 = vpop.f32.mrb[33].mxu1 }
 0x696   : > { %v2103_v11 = vpop.f32.mrb[34].mxu1 }
 0x697   : > { %2109 = vst [vmem:[%s5201_s0] sm:$0xff] %v2107_v9  ;;  %v2108_v12 = vadd.f32 %v2103_v11, %v2057_v8  ;;  %v3427_v13 = vpop.f32.mrb[35].mxu1 }
 0x699   : > { %2110 = vst [vmem:[%s5201_s0 + $0x8] sm:$0xff] %v2108_v12 }
 0x69a PF: > { %s5611_s3 = sld [smem:[#allocation49_spill]] }
 0x6a0   : > { %p3059_p4 = scmp.ne.s32.totalorder %s5611_s3, 1 }
 0x6a1   : > { %v3847_v14 = vld [vmem:[#allocation16] sm:$0xff] (!%p3059_p4)   ;;  %v4415_v15 = vmov (!%p3059_p4), 0.0   ;;  %v3848_v16 = vld [vmem:[#allocation16 + $0x8] sm:$0xff] (!%p3059_p4)   ;;  %vm4416_vm4 = vmmov (!%p3059_p4), 0   ;;  %v3849_v17 = vld [vmem:[#allocation16 + $0x10] sm:$0xff] (!%p3059_p4)   ;;  %v4417_v34 = vmov (!%p3059_p4), 0  }
 0x6a2   : > { %2114 = sbr.rel (%p3059_p4) target bundleno = 2611 (0xa33), region = 152  ;;  %3428 = vmatprep.subr.bf16.mxu0 (!%p3059_p4), %v4415_v15  ;;  %3448 = vmatprep.subr.bf16.mxu1 (!%p3059_p4), %v4415_v15  ;;  %v3856_v18 = vld [vmem:[#allocation17] sm:$0xff] (!%p3059_p4)   ;;  %v3850_v19 = vld [vmem:[#allocation16 + $0x18] sm:$0xff] (!%p3059_p4)   ;;  %v3857_v20 = vld [vmem:[#allocation17 + $0x8] sm:$0xff] (!%p3059_p4)   ;;  %s5612_s13 = sld [smem:[#allocation70_spill]] (!%p3059_p4) }
 0x6a3   : > { %3429 = vmatpush3.bf16.msra.mxu0 (!%p3059_p4), %v3847_v14  ;;  %3444 = vmatprep.mubr.msk.bf16.mxu0 (!%p3059_p4), %vm4416_vm4, %v4415_v15  ;;  %v3851_v21 = vld [vmem:[#allocation16 + $0x20] sm:$0xff] (!%p3059_p4)   ;;  %v3858_v22 = vld [vmem:[#allocation17 + $0x10] sm:$0xff] (!%p3059_p4)   ;;  %v3852_v23 = vld [vmem:[#allocation16 + $0x28] sm:$0xff] (!%p3059_p4)   ;;  %s5613_s16 = sld [smem:[#allocation72_spill]] (!%p3059_p4)  ;;  %s5614_s29 = sld [smem:[#allocation75_spill]] (!%p3059_p4) }
 0x6a4   : > { %3430 = vmatprep.subr.bf16.mxu0 (!%p3059_p4), %v4415_v15  ;;  %3464 = vmatprep.mubr.msk.bf16.mxu1 (!%p3059_p4), %vm4416_vm4, %v4415_v15  ;;  %v3859_v24 = vld [vmem:[#allocation17 + $0x18] sm:$0xff] (!%p3059_p4)   ;;  %v3853_v25 = vld [vmem:[#allocation16 + $0x30] sm:$0xff] (!%p3059_p4)   ;;  %v3860_v26 = vld [vmem:[#allocation17 + $0x20] sm:$0xff] (!%p3059_p4)   ;;  %s5615_s19 = sld [smem:[#allocation77_spill]] (!%p3059_p4) }
 0x6a5   : > { %3449 = vmatpush3.bf16.msra.mxu1 (!%p3059_p4), %v3856_v18  ;;  %v3854_v27 = vld [vmem:[#allocation16 + $0x38] sm:$0xff] (!%p3059_p4)   ;;  %v3861_v28 = vld [vmem:[#allocation17 + $0x28] sm:$0xff] (!%p3059_p4)   ;;  %v3862_v30 = vld [vmem:[#allocation17 + $0x30] sm:$0xff] (!%p3059_p4)   ;;  %3846 = vset.pattern.permute.xlu0 (!%p3059_p4), %v4417_v34 }
 0x6a6   : > { %3450 = vmatprep.subr.bf16.mxu1 (!%p3059_p4), %v4415_v15  ;;  %v3855_v29 = vld [vmem:[%s5162_s22] sm:$0xff] (!%p3059_p4)   ;;  %v3864_v33 = vld [vmem:[#allocation20] sm:$0xff] (!%p3059_p4)  }
 0x6a7   : > { %3431 = vmatpush3.bf16.msra.mxu0 (!%p3059_p4), %v3848_v16  ;;  %v3863_v31 = vld [vmem:[#allocation17 + $0x38] sm:$0xff] (!%p3059_p4)   ;;  %v2354_v32 = vld [vmem:[%s5190_s20] sm:$0xff] (!%p3059_p4)  ;;  %v3871_v39 = vld [vmem:[#allocation20 + $0x20] sm:$0xff] (!%p3059_p4)  }
 0x6a8   : > { %3432 = vmatprep.subr.bf16.mxu0 (!%p3059_p4), %v4415_v15  ;;  %2358 = vperm.xlu0 (!%p3059_p4), %3846, %v2354_v32   ;;  %v3865_v35 = vld [vmem:[#allocation20 + $0x8] sm:$0xff] (!%p3059_p4)   ;;  %v2355_v36 = vld [vmem:[%s5190_s20 + $0x8] sm:$0xff] (!%p3059_p4)  ;;  %v3866_v50 = vld [vmem:[#allocation19] sm:$0xff] (!%p3059_p4)  }
 0x6a9   : > { %3451 = vmatpush3.bf16.msra.mxu1 %v3857_v20  ;;  %v3867_v37 = vld [vmem:[#allocation20 + $0x10] sm:$0xff]   ;;  %v3869_v38 = vld [vmem:[#allocation20 + $0x18] sm:$0xff]   ;;  %v3873_v40 = vld [vmem:[#allocation20 + $0x28] sm:$0xff]  }
 0x6aa   : > { %3452 = vmatprep.subr.bf16.mxu1 %v4415_v15  ;;  %v3060_v41 = vld [vmem:[%s5612_s13] ss:$0 sm:$0xff]  ;;  %v3870_v53 = vld [vmem:[#allocation19 + $0x10] sm:$0xff]   ;;  %v3872_v54 = vld [vmem:[#allocation19 + $0x18] sm:$0xff]  }
 0x6ab   : > { %3433 = vmatpush3.bf16.msra.mxu0 %v3849_v17  ;;  %v3868_v52 = vld [vmem:[#allocation19 + $0x8] sm:$0xff]   ;;  %v3874_v55 = vld [vmem:[#allocation19 + $0x20] sm:$0xff]   ;;  %v3875_v56 = vld [vmem:[#allocation20 + $0x30] sm:$0xff]  }
 0x6ac   : > { %3434 = vmatprep.subr.bf16.mxu0 %v4415_v15  ;;  %2363 = vperm.xlu0 %3846, %v2355_v36   ;;  %v3876_v57 = vld [vmem:[#allocation19 + $0x28] sm:$0xff]   ;;  %v3877_v58 = vld [vmem:[#allocation20 + $0x38] sm:$0xff]   ;;  %v3878_v59 = vld [vmem:[#allocation19 + $0x30] sm:$0xff]  }
 0x6ad   : > { %3453 = vmatpush3.bf16.msra.mxu1 %v3858_v22  ;;  %v3879_v60 = vld [vmem:[#allocation19 + $0x38] sm:$0xff]   ;;  %v3070_v61 = vld [vmem:[%s5613_s16] ss:$0 sm:$0xff]  ;;  %v2350_v0 = vld [vmem:[%s5201_s0] sm:$0xff] }
 0x6ae   : > { %3454 = vmatprep.subr.bf16.mxu1 %v4415_v15  ;;  %v2351_v4 = vld [vmem:[%s5201_s0 + $0x8] sm:$0xff]  ;;  %v3880_v8 = vld [vmem:[#allocation22] sm:$0xff]   ;;  %v3882_v17 = vld [vmem:[#allocation22 + $0x10] sm:$0xff]  }
 0x6af   : > { %3435 = vmatpush3.bf16.msra.mxu0 %v3850_v19  ;;  %v3881_v14 = vld [vmem:[#allocation22 + $0x8] sm:$0xff]   ;;  %v3883_v18 = vld [vmem:[#allocation22 + $0x18] sm:$0xff]   ;;  %v3884_v19 = vld [vmem:[#allocation22 + $0x20] sm:$0xff]  }
 0x6b0   : > { %3436 = vmatprep.subr.bf16.mxu0 %v4415_v15  ;;  %v3885_v20 = vld [vmem:[#allocation22 + $0x28] sm:$0xff]   ;;  %v3887_v22 = vld [vmem:[#allocation22 + $0x38] sm:$0xff]  }
 0x6b1   : > { %3455 = vmatpush3.bf16.msra.mxu1 %v3859_v24 }
 0x6b2   : > { %3456 = vmatprep.subr.bf16.mxu1 %v4415_v15 }
 0x6b3   : > { %3437 = vmatpush3.bf16.msra.mxu0 %v3851_v21  ;;  %v3886_v21 = vld [vmem:[#allocation22 + $0x30] sm:$0xff]  }
 0x6b4   : > { %3438 = vmatprep.subr.bf16.mxu0 %v4415_v15 }
 0x6b5   : > { %3457 = vmatpush3.bf16.msra.mxu1 %v3860_v26 }
 0x6b6   : > { %3458 = vmatprep.subr.bf16.mxu1 %v4415_v15 }
 0x6b7   : > { %3439 = vmatpush3.bf16.msra.mxu0 %v3852_v23 }
 0x6b8   : > { %3440 = vmatprep.subr.bf16.mxu0 %v4415_v15 }
 0x6b9   : > { %3459 = vmatpush3.bf16.msra.mxu1 %v3861_v28  ;;  %v3095_v28 = vld [vmem:[%s5614_s29] ss:$0 sm:$0xff] }
 0x6ba   : > { %3460 = vmatprep.subr.bf16.mxu1 %v4415_v15 }
 0x6bb   : > { %3441 = vmatpush3.bf16.msra.mxu0 %v3853_v25 }
 0x6bc   : > { %3442 = vmatprep.subr.bf16.mxu0 %v4415_v15 }
 0x6bd   : > { %3461 = vmatpush3.bf16.msra.mxu1 %v3862_v30 }
 0x6be   : > { %3462 = vmatprep.subr.bf16.mxu1 %v4415_v15 }
 0x6bf   : > { %3443 = vmatpush3.bf16.msra.mxu0 %v3854_v27 }
 0x6c0   : > { %3468 = vmatprep.subr.bf16.mxu0 %v4415_v15 }
 0x6c1   : > { %3463 = vmatpush3.bf16.msra.mxu1 %v3863_v31 }
 0x6c2   : > { %3445 = vmatmul.mubr.bf16.vlgmr.msra.gmra.mrb[0].mxu0 %v3855_v29  ;;  %3488 = vmatprep.subr.bf16.mxu1 %v4415_v15 }
 0x6c3   : > { %3484 = vmatprep.mubr.msk.bf16.mxu0 %vm4416_vm4, %v4415_v15  ;;  %3469 = vmatpush3.bf16.msra.mxu0 %v3864_v33 }
 0x6c4   : > { %3470 = vmatprep.subr.bf16.mxu0 %v4415_v15 }
 0x6c7   : > { %3471 = vmatpush3.bf16.msra.mxu0 %v3865_v35 }
 0x6c8   : > { %3472 = vmatprep.subr.bf16.mxu0 %v4415_v15 }
 0x6cb   : > { %3473 = vmatpush3.bf16.msra.mxu0 %v3867_v37 }
 0x6cc   : > { %3474 = vmatprep.subr.bf16.mxu0 %v4415_v15 }
 0x6cf   : > { %3475 = vmatpush3.bf16.msra.mxu0 %v3869_v38  ;;  %v3096_v38 = vld [vmem:[%s5615_s19] ss:$0 sm:$0xff] }
 0x6d0   : > { %3476 = vmatprep.subr.bf16.mxu0 %v4415_v15 }
 0x6d3   : > { %3477 = vmatpush3.bf16.msra.mxu0 %v3871_v39 }
 0x6d4   : > { %3478 = vmatprep.subr.bf16.mxu0 %v4415_v15 }
 0x6d7   : > { %3479 = vmatpush3.bf16.msra.mxu0 %v3873_v40 }
 0x6d8   : > { %3480 = vmatprep.subr.bf16.mxu0 %v4415_v15 }
 0x6db   : > { %3481 = vmatpush3.bf16.msra.mxu0 %v3875_v56 }
 0x6dc   : > { %3482 = vmatprep.subr.bf16.mxu0 %v4415_v15 }
 0x6df   : > { %3483 = vmatpush3.bf16.msra.mxu0 %v3877_v58 }
 0x6e0   : > { %3508 = vmatprep.subr.bf16.mxu0 %v4415_v15 }
 0x727   : > { %v2359_v62 = vpop.permute.xlu0 %2358 }
 0x72b   : > { %v2364_v11 = vpop.permute.xlu0 %2363 }
 0x795   : > { %v2228_v42 = vpop.f32.mrb[0].mxu0 }
 0x796   : > { %v2229_v43 = vadd.f32 %v3060_v41, %v2228_v42  ;;  %v3446_v44 = vpop.f32.mrb[1].mxu0 }
 0x797   : > { %v2231_v45 = vpop.f32.mrb[2].mxu0 }
 0x798   : > { %v2232_v46 = vadd.f32 %v3060_v41, %v2231_v45  ;;  %v3447_v47 = vpop.f32.mrb[3].mxu0  ;;  %v2235_v48 = vmax.f32 %v2229_v43, 0.0 }
 0x79a   : > { %v2236_v49 = vmax.f32 %v2232_v46, 0.0 }
 0x79c   : > { %v2253_v51 = vpack.c.bf16 %v2236_v49, %v2235_v48 }
 0x79e   : > { %3465 = vmatmul.mubr.bf16.vlgmr.msra.gmra.mrb[0].mxu1 %v2253_v51 }
 0x79f   : > { %3489 = vmatpush3.bf16.msra.mxu1 %v3866_v50  ;;  %3504 = vmatprep.mubr.msk.bf16.mxu1 %vm4416_vm4, %v4415_v15 }
 0x7a0   : > { %3490 = vmatprep.subr.bf16.mxu1 %v4415_v15 }
 0x7a3   : > { %3491 = vmatpush3.bf16.msra.mxu1 %v3868_v52 }
 0x7a4   : > { %3492 = vmatprep.subr.bf16.mxu1 %v4415_v15 }
 0x7a7   : > { %3493 = vmatpush3.bf16.msra.mxu1 %v3870_v53 }
 0x7a8   : > { %3494 = vmatprep.subr.bf16.mxu1 %v4415_v15 }
 0x7ab   : > { %3495 = vmatpush3.bf16.msra.mxu1 %v3872_v54 }
 0x7ac   : > { %3496 = vmatprep.subr.bf16.mxu1 %v4415_v15 }
 0x7af   : > { %3497 = vmatpush3.bf16.msra.mxu1 %v3874_v55 }
 0x7b0   : > { %3498 = vmatprep.subr.bf16.mxu1 %v4415_v15 }
 0x7b3   : > { %3499 = vmatpush3.bf16.msra.mxu1 %v3876_v57 }
 0x7b4   : > { %3500 = vmatprep.subr.bf16.mxu1 %v4415_v15 }
 0x7b7   : > { %3501 = vmatpush3.bf16.msra.mxu1 %v3878_v59 }
 0x7b8   : > { %3502 = vmatprep.subr.bf16.mxu1 %v4415_v15 }
 0x7bb   : > { %3503 = vmatpush3.bf16.msra.mxu1 %v3879_v60 }
 0x871   : > { %v2343_v63 = vpop.f32.mrb[0].mxu1 }
 0x872   : > { %v2344_v1 = vadd.f32 %v3070_v61, %v2343_v63  ;;  %v3466_v2 = vpop.f32.mrb[1].mxu1 }
 0x873   : > { %v2346_v3 = vpop.f32.mrb[2].mxu1 }
 0x874   : > { %v2352_v5 = vsub.f32 %v2350_v0, %v2344_v1  ;;  %v2347_v6 = vadd.f32 %v3070_v61, %v2346_v3  ;;  %v3467_v7 = vpop.f32.mrb[3].mxu1 }
 0x876   : > { %v2353_v9 = vsub.f32 %v2351_v4, %v2347_v6  ;;  %v2401_v10 = vpack.c.bf16 %v2347_v6, %v2344_v1  ;;  %v2366_v12 = vmul.f32 %v2359_v62, %v2352_v5 }
 0x878   : > { %v2367_v13 = vmul.f32 %v2364_v11, %v2353_v9  ;;  %3485 = vmatmul.mubr.bf16.vlgmr.msra.gmra.mrb[4].mxu0 %v2401_v10 }
 0x879   : > { %3509 = vmatpush3.bf16.msra.mxu0 %v3880_v8  ;;  %3524 = vmatprep.mubr.msk.bf16.mxu0 %vm4416_vm4, %v4415_v15 }
 0x87a   : > { %v2384_v16 = vpack.c.bf16 %v2367_v13, %v2366_v12  ;;  %3510 = vmatprep.subr.bf16.mxu0 %v4415_v15 }
 0x87c   : > { %3505 = vmatmul.mubr.bf16.vlgmr.msra.gmra.mrb[4].mxu1 %v2384_v16 }
 0x87d   : > { %3511 = vmatpush3.bf16.msra.mxu0 %v3881_v14 }
 0x87e   : > { %3512 = vmatprep.subr.bf16.mxu0 %v4415_v15 }
 0x881   : > { %3513 = vmatpush3.bf16.msra.mxu0 %v3882_v17 }
 0x882   : > { %3514 = vmatprep.subr.bf16.mxu0 %v4415_v15 }
 0x885   : > { %3515 = vmatpush3.bf16.msra.mxu0 %v3883_v18 }
 0x886   : > { %3516 = vmatprep.subr.bf16.mxu0 %v4415_v15 }
 0x889   : > { %3517 = vmatpush3.bf16.msra.mxu0 %v3884_v19 }
 0x88a   : > { %3518 = vmatprep.subr.bf16.mxu0 %v4415_v15 }
 0x88d   : > { %3519 = vmatpush3.bf16.msra.mxu0 %v3885_v20 }
 0x88e   : > { %3520 = vmatprep.subr.bf16.mxu0 %v4415_v15 }
 0x891   : > { %3521 = vmatpush3.bf16.msra.mxu0 %v3886_v21 }
 0x892   : > { %3522 = vmatprep.subr.bf16.mxu0 %v4415_v15 }
 0x895   : > { %3523 = vmatpush3.bf16.msra.mxu0 %v3887_v22 }
 0x94b   : > { %v2484_v23 = vpop.f32.mrb[4].mxu0 }
 0x94c   : > { %v3486_v24 = vpop.f32.mrb[5].mxu0 }
 0x94d   : > { %v2487_v25 = vpop.f32.mrb[6].mxu0 }
 0x94e   : > { %v3487_v26 = vpop.f32.mrb[7].mxu0 }
 0x94f   : > { %v2573_v27 = vpop.f32.mrb[4].mxu1 }
 0x950   : > { %v2574_v29 = vadd.f32 %v2573_v27, %v2484_v23  ;;  %v3506_v30 = vpop.f32.mrb[5].mxu1 }
 0x951   : > { %v2576_v31 = vpop.f32.mrb[6].mxu1 }
 0x952   : > { %v2587_v32 = vadd.f32 %v3095_v28, %v2574_v29  ;;  %v2577_v33 = vadd.f32 %v2576_v31, %v2487_v25  ;;  %v3507_v34 = vpop.f32.mrb[7].mxu1 }
 0x954   : > { %v2588_v15 = vadd.f32 %v3095_v28, %v2577_v33  ;;  %v2589_v35 = vmax.f32 %v2587_v32, 0.0 }
 0x956   : > { %v2590_v36 = vmax.f32 %v2588_v15, 0.0 }
 0x958   : > { %v2607_v37 = vpack.c.bf16 %v2590_v36, %v2589_v35 }
 0x95a   : > { %3525 = vmatmul.mubr.bf16.vlgmr.msra.gmra.mrb[8].mxu0 %v2607_v37 }
 0xa2d   : > { %v2697_v39 = vpop.f32.mrb[8].mxu0 }
 0xa2e   : > { %v2698_v40 = vadd.f32 %v3096_v38, %v2697_v39  ;;  %v3526_v41 = vpop.f32.mrb[9].mxu0 }
 0xa2f   : > { %v2700_v42 = vpop.f32.mrb[10].mxu0 }
 0xa30   : > { %2704 = vst [vmem:[%s5201_s0] sm:$0xff] %v2698_v40  ;;  %v2701_v43 = vadd.f32 %v3096_v38, %v2700_v42  ;;  %v3527_v44 = vpop.f32.mrb[11].mxu0 }
 0xa32   : > { %2705 = vst [vmem:[%s5201_s0 + $0x8] sm:$0xff] %v2701_v43 }
 0xa33 PF: > { %s5616_s5 = sld [smem:[#allocation50_spill]]  ;;  %s5617_s15 = sld [smem:[#allocation78_spill]] }
 0xa34   : > { %s2720_s2 = sshll.u32 %s5201_s0, 4  ;;  %s2707_s4 = scalar_lea.sflag [#allocation7], %s5159_s27  ;;  %s5353_s2 = int_to_ptr.vmem [resolvable:$true] %s2720_s2 }
 0xa35   : > { %s4222_s1 = scalar_lea.vmem %s5353_s2, 256  ;;  %p5618_p1 = scmp.ne.s32.totalorder %s5572_s12, 0 }
 0xa36   : > { %p4223_p2 = scmp.ne.s32.totalorder %s5353_s2, %s4222_s1  ;;  %s4418_s3 = smov [#allocation23]  }
 0xa37   : > { %s4226_s22 = sshll.u32 %s4418_s3, 4  ;;  %s4227_s22 = int_to_ptr.vmem [resolvable:$false] %s4226_s22 }
 0xa38   : > { %p4224_p8 = pnand %p4223_p2, %p5618_p1  ;;  %s4228_s20 = scalar_lea.vmem %s4227_s22, 512 }
 0xa39   : > { %s3113_s26 = sshll.u32 %s5616_s5, 8  ;;  %p4229_p12 = scmp.lt.s32.totalorder %s5353_s2, %s4227_s22 }
 0xa3a   : > { %s5350_s8 = scalar_lea.hbm %s5617_s15, %s3113_s26  ;;  %p4225_p0 = pneg %p4224_p8 }
 0xa3b   : > { %p4230_p6 = scmp.lt.s32.totalorder %s4228_s20, %s4222_s1 }
 0xa3d   : > { %p4231_p11 = por %p4230_p6, %p4229_p12 }
 0xa3f   : > { %p4232_p10 = pnand %p4231_p11, %p4225_p0 }
 0xa41   : > { %4235 = shalt.err (!%p4232_p10)
}
 0xa42   : > { %s4236_s0 = scalar_lea.hbm %s5350_s8, 256  ;;  %s4240_s6 = scalar_lea.hbm %s5617_s15, 512 }
 0xa43   : > { %p4237_p13 = scmp.ne.s32.totalorder %s5350_s8, %s4236_s0  ;;  %p4241_p3 = scmp.lt.u32.totalorder %s5350_s8, %s5617_s15 }
 0xa44   : > { %p4242_p9 = scmp.lt.u32.totalorder %s4240_s6, %s4236_s0  ;;  %p4244_p2 = scmp.lt.u32.totalorder %s4236_s0, %s5350_s8 }
 0xa45   : > { %p4238_p7 = pnand %p4237_p13, %p5618_p1 }
 0xa46   : > { %p4243_p4 = por %p4242_p9, %p4241_p3 }
 0xa47   : > { %p4239_p5 = pneg %p4238_p7 }
 0xa48   : > { %p4245_p8 = por %p4244_p2, %p4243_p4 }
 0xa4a   : > { %p4246_p0 = pnand %p4245_p8, %p4239_p5 }
 0xa4c   : > { %4249 = shalt.err (!%p4246_p0)
}
 0xa4d   : > { %s4419_s10 = smov 128   ;;  %s4420_s29 = smov 8  }
 0xa4e   : > { %3590 = dma.vmem_to_hbm [thread:$0]  (%p5618_p1), %s5353_s2, 256, %s5350_s8, %s2707_s4, %s4419_s10, %s4419_s10, %s4420_s29  }
 0xa4f PF: > { %s5619_s28 = sld [smem:[#allocation41_spill]]  ;;  %s5620_s30 = sld [smem:[#allocation46_spill]] }
 0xa50   : > { %p3656_p12 = scmp.ge.s32.totalorder %s4394_s25, 2 }
 0xa55   : > { %s2735_s19 = sand.u32 1, %s5619_s28   ;;  %p5621_p6 = scmp.ne.s32.totalorder %s5620_s30, 0 }
 0xa56   : > { %s2736_s5 = scalar_lea.sflag [#allocation7], %s2735_s19 }
 0xa57   : > { %p3636_p11 = pnand %p3656_p12, %p5621_p6 }
 0xa59   : > { %4337 = dma.done.wait (!%p3636_p11), %s2736_s5, 256  }
 0xa5a   : > { %4339 = vsyncadd (!%p3636_p11), %s2736_s5, 4294967040  ;;  %s50_s25 = sadd.s32 1, %s4394_s25   ;;  %s5623_s12 = sld [smem:[#allocation42_spill]] }
 0xa5b   : > { %p5384_p10 = scmp.ge.s32.totalorder %s50_s25, 6   ;;  %s5624_s28 = sld [smem:[#allocation43_spill]] }
 0xa5c   : > { %s5625_s1 = sld [smem:[#allocation44_spill]]  ;;  %s5626_s0 = sld [smem:[#allocation45_spill]] }
 0xa5d   : > { %s5627_s5 = sld [smem:[#allocation56_spill]]  ;;  %s5628_s30 = sld [smem:[#allocation47_spill]] }
 0xa5e   : > { %s5629_s6 = sld [smem:[#allocation48_spill]]  ;;  %s5630_s22 = sld [smem:[#allocation57_spill]] }
 0xa5f   : > { %s5631_s2 = sld [smem:[#allocation51_spill]]  ;;  %s5632_s27 = sld [smem:[#allocation53_spill]] }
 0xa60   : > { %s5633_s3 = sld [smem:[#allocation54_spill]]  ;;  %s5635_s26 = smov %s5623_s12 }
 0xa61   : > { %s5636_s29 = smov %s5029_s23  ;;  %s5637_s23 = smov %s4386_s24 }
 0xa62   :  { %49 = sbr.rel (!%p5384_p10) target bundleno = 51 (0x33), region = 215 }
 0xa65   : > { %s5638_s24 = smov %s5632_s27 }
 0xa69   :  { %2741 = vsyncpa [#allocation6], 1 }
 0xa6a   :  { %2743 = vsyncpa [#allocation6 + $0x1], 1 }
 0xa6b   :  { %2744 = vsyncpa [#allocation9], 1 }
 0xa6c   :  { %2746 = vsyncpa [#allocation9 + $0x1], 1 }
 0xa6d   :  { %2747 = vsyncpa [#allocation12], 1 }
 0xa6e   :  { %2748 = vsyncpa [#allocation15], 1 }
 0xa6f   :  { %2749 = vsyncpa [#allocation18], 1 }
 0xa70   :  { %2750 = vsyncpa [#allocation21], 1 }
 0xa71   :  { %2751 = vsyncpa [#allocation7], 1 }
 0xa72   :  { %2753 = vsyncpa [#allocation7 + $0x1], 1 }

</bundles_post_ra>
